<compile_context>
chip_gen: v7x
topology: tpu7x:2x2x1
jax: 0.10.0
libtpu: 0.0.40
codegen_flags: <defaults>
</compile_context>

<pallas_src>
import math
import jax
import jax.numpy as jnp
from jax.experimental import pallas as pl
from jax.experimental.pallas import tpu as pltpu

CIN = 3
COUT = 3
KSIZE = 25              # conv kernel == stride
POOL = 3                # maxpool kernel == stride
COUT_PAD = 128          # conv output channels padded to a full lane width
TG_MAX_DEFAULT = 192    # max pooling windows per tile: 2 x 9*192*1875*4B ~ 25 MiB patches
VMEM_LIMIT_BYTES = 48 * 1024 * 1024   # fits v7x 64 MiB/TC; well under v5e/v6e 128 MiB


# ----------------------------- Pallas kernel -------------------------------

def conv_relu_maxpool_kernel(p_ref, w_ref, b_ref, o_ref):
    # p_ref: (9, tg, K)  im2col patches, pooling-position major
    # w_ref: (K, 128)    flattened conv weight (channel dim zero-padded to 128 lanes)
    # b_ref: (1, 128)    bias (zero-padded)
    # o_ref: (tg, 128)   relu(max_j(patch_j @ W) + b)
    tg = o_ref.shape[0]
    k = p_ref.shape[-1]
    # One merged MXU matmul over all 9 pooling positions: (9*tg, K) @ (K, 128).
    # The reshape only merges leading sublane dims (tg is a multiple of 8) -> free.
    p = p_ref[...].reshape(POOL * POOL * tg, k)
    y = jnp.dot(p, w_ref[...], preferred_element_type=jnp.float32)
    # Elementwise max over the 9 pooling-position slabs (pure VPU, no XLU).
    m = jnp.max(y.reshape(POOL * POOL, tg, COUT_PAD), axis=0)
    # Bias + ReLU hoisted out of the reduction (monotone, so exactly equivalent).
    o_ref[...] = jnp.maximum(m + b_ref[...], 0.0).astype(o_ref.dtype)


# ------------------------------ wrapper -------------------------------------

def _round_up(x, m):
    return ((x + m - 1) // m) * m


def _choose_tile(G, tg_max):
    """Pick tg (multiple of 8) that minimizes G-padding for at most ~ceil(G/tg_max) tiles."""
    n_tiles = max(-(-G // tg_max), 1)
    if n_tiles > 1 and n_tiles % 2:
        n_tiles += 1                       # even grid -> balanced v7x megacore sharding
    tg = _round_up(-(-G // n_tiles), 8)
    return tg


def backbone_naive_forward(x, weight, bias, *, tg_max=TG_MAX_DEFAULT, use_bf16=False):
    """x: (N, 3, H, W) f32 NCHW; weight: (3, 3, 25, 25); bias: (3,). Returns NCHW f32."""
    N, C, H, W = x.shape
    assert C == CIN
    OH = (H - KSIZE) // KSIZE + 1
    OW = (W - KSIZE) // KSIZE + 1
    PH = OH // POOL
    PW = OW // POOL
    K = C * KSIZE * KSIZE
    G = N * PH * PW                          # number of 3x3 pooling windows
    if G == 0:                               # degenerate input (< 75 px): empty pool output
        return jnp.zeros((N, COUT, PH, PW), dtype=jnp.float32)

    in_dtype = jnp.bfloat16 if use_bf16 else jnp.float32
    xs = x.astype(in_dtype)

    # --- im2col glue: only conv outputs feeding a complete pooling window are needed ---
    xt = xs[:, :, : PH * POOL * KSIZE, : PW * POOL * KSIZE]
    xt = xt.reshape(N, C, PH, POOL, KSIZE, PW, POOL, KSIZE)
    # -> (pool_h, pool_w, N, PH, PW, C, kh, kw): pooling-position major so each of the
    # 9 slabs is a contiguous (G, K) matrix feeding a clean MXU matmul.
    patches = xt.transpose(3, 6, 0, 2, 5, 1, 4, 7).reshape(POOL * POOL, G, K)

    tg = _choose_tile(G, tg_max)             # adaptive tile: minimal padding, big tiles
    Gp = _round_up(G, tg)
    if Gp != G:
        patches = jnp.pad(patches, ((0, 0), (0, Gp - G), (0, 0)))

    w_mat = weight.reshape(COUT, K).T        # (K, COUT), matches the (C, kh, kw) patch order
    w_p = jnp.pad(w_mat, ((0, 0), (0, COUT_PAD - COUT))).astype(in_dtype)
    b_p = jnp.pad(bias.reshape(1, COUT),
                  ((0, 0), (0, COUT_PAD - COUT))).astype(jnp.float32)

    itemsize = jnp.dtype(in_dtype).itemsize
    pooled = pl.pallas_call(
        conv_relu_maxpool_kernel,
        out_shape=jax.ShapeDtypeStruct((Gp, COUT_PAD), jnp.float32),
        grid=(Gp // tg,),
        in_specs=[
            pl.BlockSpec((POOL * POOL, tg, K), lambda i: (0, i, 0)),
            # Constant index_map -> single buffer (no pointless double-buffering).
            pl.BlockSpec((K, COUT_PAD), lambda i: (0, 0), pipeline_mode=pl.Buffered(1)),
            pl.BlockSpec((1, COUT_PAD), lambda i: (0, 0), pipeline_mode=pl.Buffered(1)),
        ],
        out_specs=pl.BlockSpec((tg, COUT_PAD), lambda i: (i, 0)),
        compiler_params=pltpu.CompilerParams(
            dimension_semantics=("parallel",),   # shard tiles across both v7x TCs
            vmem_limit_bytes=VMEM_LIMIT_BYTES,
            # Let XLA fuse the im2col transpose/pad into the patches input fetch.
            allow_input_fusion=[True, False, False],
        ),
        cost_estimate=pl.CostEstimate(
            flops=2 * Gp * POOL * POOL * K * COUT_PAD,
            transcendentals=0,
            bytes_accessed=(itemsize * (POOL * POOL * Gp * K + K * COUT_PAD)
                            + 4 * (COUT_PAD + Gp * COUT_PAD)),
        ),
    )(patches, w_p, b_p)

    out = pooled[:G, :COUT].reshape(N, PH, PW, COUT).transpose(0, 3, 1, 2)  # NCHW
    return out


# ------------------------------ reference -----------------------------------

def _reference(x, weight, bias):
    conv = jax.lax.conv_general_dilated(
        x, weight, window_strides=(KSIZE, KSIZE), padding="VALID",
        dimension_numbers=("NCHW", "OIHW", "NCHW"),
    ) + bias.reshape(1, COUT, 1, 1)
    relu = jnp.maximum(conv, 0.0)
    return jax.lax.reduce_window(
        relu, -jnp.inf, jax.lax.max,
        window_dimensions=(1, 1, POOL, POOL),
        window_strides=(1, 1, POOL, POOL),
        padding="VALID",
    )


if __name__ == "__main__":
    key = jax.random.PRNGKey(0)
    kw, kb, kx = jax.random.split(key, 3)

    # Deterministic parameter init (PyTorch conv default: U(-1/sqrt(fan_in), 1/sqrt(fan_in)))
    fan_in = CIN * KSIZE * KSIZE
    bound = 1.0 / math.sqrt(fan_in)
    weight = jax.random.uniform(kw, (COUT, CIN, KSIZE, KSIZE),
                                minval=-bound, maxval=bound, dtype=jnp.float32)
    bias = jax.random.uniform(kb, (COUT,), minval=-bound, maxval=bound, dtype=jnp.float32)

    # The module's natural shape: 224x224 -> conv (k=s=25) gives 8x8, pool (3,3) gives 2x2.
    x = jax.random.normal(kx, (2, CIN, 224, 224), dtype=jnp.float32)

    out = jax.block_until_ready(backbone_naive_forward(x, weight, bias))
    ref = jax.block_until_ready(_reference(x, weight, bias))
    assert out.shape == ref.shape == (2, COUT, 2, 2)
    assert jnp.allclose(out, ref, rtol=2e-4, atol=2e-4), float(jnp.max(jnp.abs(out - ref)))

    # out_features as in the module __init__ (1x3x224x224 input): 3*2*2 = 12
    out_features = COUT * (((224 - KSIZE) // KSIZE + 1) // POOL) ** 2
    assert out_features == 12

    # Ragged-G path: 375x375 -> 15x15 conv, 5x5 pool, G=50 -> one adaptive tg=56 tile.
    x2 = jax.random.normal(jax.random.PRNGKey(1), (2, CIN, 375, 375), dtype=jnp.float32)
    out2 = jax.block_until_ready(backbone_naive_forward(x2, weight, bias))
    ref2 = jax.block_until_ready(_reference(x2, weight, bias))
    assert out2.shape == ref2.shape == (2, COUT, 5, 5)
    assert jnp.allclose(out2, ref2, rtol=2e-4, atol=2e-4)

    # Multi-tile path (forces a small tg_max so the grid has several steps).
    out3 = jax.block_until_ready(backbone_naive_forward(x2, weight, bias, tg_max=16))
    assert jnp.allclose(out3, ref2, rtol=2e-4, atol=2e-4)

    # Optional bf16-input fast path (f32 accumulation): looser tolerance expected (~1e-3 rel).
    out_bf16 = jax.block_until_ready(backbone_naive_forward(x, weight, bias, use_bf16=True))
    assert jnp.allclose(out_bf16, ref, rtol=5e-2, atol=5e-2)

    print("KERNEL_OK")
</pallas_src>

<mosaic_0001>
module attributes {stable_mosaic.version = 11 : i64} {
  func.func @conv_relu_maxpool_kernel(%arg0: i32, %arg1: memref<9x8x1875xf32, #tpu.memory_space<vmem>>, %arg2: memref<1875x128xf32, #tpu.memory_space<vmem>>, %arg3: memref<1x128xf32, #tpu.memory_space<vmem>>, %arg4: memref<8x128xf32, #tpu.memory_space<vmem>>) attributes {dimension_semantics = [#tpu.dimension_semantics<parallel>], iteration_bounds = array<i64: 1>, scalar_prefetch = 0 : i64, scratch_operands = 0 : i64, tpu.core_type = #tpu.core_type<tc>, window_params = [{transform_indices = @transform_0, window_bounds = array<i64: 9, 8, 1875>}, {pipeline_mode = #tpu.pipeline_mode<synchronous>, transform_indices = @transform_1, window_bounds = array<i64: 1875, 128>}, {pipeline_mode = #tpu.pipeline_mode<synchronous>, transform_indices = @transform_2, window_bounds = array<i64: 1, 128>}, {transform_indices = @transform_3, window_bounds = array<i64: 8, 128>}]} {
    %c0 = arith.constant 0 : index
    %c0_0 = arith.constant 0 : index
    %c0_1 = arith.constant 0 : index
    %0 = vector.load %arg1[%c0, %c0_0, %c0_1] : memref<9x8x1875xf32, #tpu.memory_space<vmem>>, vector<9x8x1875xf32>
    %1 = vector.shape_cast %0 : vector<9x8x1875xf32> to vector<72x1875xf32>
    %c0_2 = arith.constant 0 : index
    %c0_3 = arith.constant 0 : index
    %2 = vector.load %arg2[%c0_2, %c0_3] : memref<1875x128xf32, #tpu.memory_space<vmem>>, vector<1875x128xf32>
    %cst = arith.constant dense<0.000000e+00> : vector<72x128xf32>
    %3 = tpu.matmul %1, %2, %cst {dimension_numbers = #tpu.dot_dimension_numbers<[1], [0], [0], [1], [0, 0, 1, 1], [], []>} : vector<72x1875xf32>, vector<1875x128xf32>, vector<72x128xf32> -> vector<72x128xf32>
    %4 = vector.shape_cast %3 : vector<72x128xf32> to vector<9x8x128xf32>
    %cst_4 = arith.constant dense<0xFF800000> : vector<8x128xf32>
    %5 = vector.multi_reduction <maximumf>, %4, %cst_4 [0] : vector<9x8x128xf32> to vector<8x128xf32>
    %c0_5 = arith.constant 0 : index
    %c0_6 = arith.constant 0 : index
    %6 = vector.load %arg3[%c0_5, %c0_6] : memref<1x128xf32, #tpu.memory_space<vmem>>, vector<1x128xf32>
    %7 = vector.broadcast %6 : vector<1x128xf32> to vector<8x128xf32>
    %8 = arith.addf %5, %7 : vector<8x128xf32>
    %cst_7 = arith.constant 0.000000e+00 : f32
    %9 = vector.broadcast %cst_7 : f32 to vector<8x128xf32>
    %10 = arith.maximumf %8, %9 : vector<8x128xf32>
    %c0_8 = arith.constant 0 : index
    %c0_9 = arith.constant 0 : index
    %11 = vector.load %arg4[%c0_8, %c0_9] : memref<8x128xf32, #tpu.memory_space<vmem>>, vector<8x128xf32>
    tpu.vector_store %arg4[%c0_8, %c0_9], %10 {strides = array<i32>} : memref<8x128xf32, #tpu.memory_space<vmem>>, vector<8x128xf32>,
    return
  }
  func.func @transform_0(%arg0: i32) -> (i32, i32, i32) {
    %c0_i32 = arith.constant 0 : i32
    %c0_i32_0 = arith.constant 0 : i32
    %c0_i32_1 = arith.constant 0 : i32
    return %c0_i32, %arg0, %c0_i32_0 : i32, i32, i32
  }
  func.func @transform_1(%arg0: i32) -> (i32, i32) {
    %c0_i32 = arith.constant 0 : i32
    %c0_i32_0 = arith.constant 0 : i32
    %c0_i32_1 = arith.constant 0 : i32
    return %c0_i32, %c0_i32_0 : i32, i32
  }
  func.func @transform_2(%arg0: i32) -> (i32, i32) {
    %c0_i32 = arith.constant 0 : i32
    %c0_i32_0 = arith.constant 0 : i32
    %c0_i32_1 = arith.constant 0 : i32
    return %c0_i32, %c0_i32_0 : i32, i32
  }
  func.func @transform_3(%arg0: i32) -> (i32, i32) {
    %c0_i32 = arith.constant 0 : i32
    %c0_i32_0 = arith.constant 0 : i32
    return %arg0, %c0_i32 : i32, i32
  }
}

</mosaic_0001>

<bundles_post_ra>
// kernel: tpu_custom_call.1
= control target key start
LH: loop header
LB: loop body
LE: loop exit
PB: predicated region body
PF: predicated region fallthrough
CT: control target
= control target key end

     0   :  { %8 = vsyncpa [#allocation3], 0  ;;  %s2353_s0 = inlined_call_operand.hbm [shape: f32[9,8,1875], index: 0, kind: input, shape index: {}]   ;;  %s2354_s1 = inlined_call_operand.hbm [shape: f32[1875,128], index: 1, kind: input, shape index: {}]   ;;  %s2355_s2 = inlined_call_operand.vmem [shape: f32[1,128], index: 2, kind: input, shape index: {}]   ;;  %s2356_s3 = inlined_call_operand.hbm [shape: f32[8,128], index: 3, kind: output, shape index: {}]  }
   0x1   :  { %9 = vsyncpa [#allocation6], 0 }
   0x2   :  { %10 = vsyncpa [#allocation4], 0  ;;  %s2173_s12 = smov [#allocation2]   ;;  %s2101_s16 = scalar_lea.hbm %s2353_s0, 17280 }
   0x3   :  { %s16_s13 = sshll.u32 %s2173_s12, 4  ;;  %p2102_p0 = scmp.ne.s32.totalorder %s2353_s0, %s2101_s16  ;;  %s17_s13 = int_to_ptr.vmem [resolvable:$true] %s16_s13 }
   0x4   :  { %p2105_p1 = scmp.lt.u32.totalorder %s2101_s16, %s2353_s0 }
   0x6   :  { %p2107_p2 = pnand %p2105_p1, %p2102_p0 }
   0x8   :  { %2110 = shalt.err (!%p2107_p2)
}
   0x9   :  { %s2111_s21 = scalar_lea.vmem %s17_s13, 17280  ;;  %p2116_p4 = scmp.lt.s32.totalorder %s17_s13, %s17_s13 }
   0xa   :  { %p2112_p3 = scmp.ne.s32.totalorder %s17_s13, %s2111_s21  ;;  %p2117_p5 = scmp.lt.s32.totalorder %s2111_s21, %s2111_s21 }
   0xc   :  { %p2118_p6 = por %p2117_p5, %p2116_p4 }
   0xe   :  { %p2119_p7 = pnand %p2118_p6, %p2112_p3 }
  0x10   :  { %2122 = shalt.err (!%p2119_p7)
}
  0x11   :  { %s2174_s22 = smov 1920   ;;  %s2175_s23 = smov 120  }
  0x12   :  { %22 = dma.hbm_to_vmem [thread:$0]  %s2353_s0, 17280, %s17_s13, [#allocation3], %s2174_s22, %s2174_s22, %s2175_s23  }
  0x13   :  { %s2176_s26 = smov [#allocation5]   ;;  %s2123_s30 = scalar_lea.hbm %s2354_s1, 30080 }
  0x14   :  { %s28_s27 = sshll.u32 %s2176_s26, 4  ;;  %p2124_p8 = scmp.ne.s32.totalorder %s2354_s1, %s2123_s30  ;;  %s29_s27 = int_to_ptr.vmem [resolvable:$true] %s28_s27 }
  0x15   :  { %p2127_p9 = scmp.lt.u32.totalorder %s2123_s30, %s2354_s1 }
  0x17   :  { %p2129_p10 = pnand %p2127_p9, %p2124_p8 }
  0x19   :  { %2132 = shalt.err (!%p2129_p10)
}
  0x1a   :  { %s2133_s8 = scalar_lea.vmem %s29_s27, 30080  ;;  %p2138_p12 = scmp.lt.s32.totalorder %s29_s27, %s29_s27 }
  0x1b   :  { %p2134_p11 = scmp.ne.s32.totalorder %s29_s27, %s2133_s8  ;;  %p2139_p13 = scmp.lt.s32.totalorder %s2133_s8, %s2133_s8 }
  0x1d   :  { %p2140_p0 = por %p2139_p13, %p2138_p12 }
  0x1f   :  { %p2141_p1 = pnand %p2140_p0, %p2134_p11 }
  0x21   :  { %2144 = shalt.err (!%p2141_p1)
}
  0x22   :  { %s2177_s0 = smov 128   ;;  %s2178_s9 = smov 8  }
  0x23   :  { %34 = dma.hbm_to_vmem [thread:$0]  %s2354_s1, 30080, %s29_s27, [#allocation6], %s2177_s0, %s2177_s0, %s2178_s9  }
  0x24   :  { %2167 = dma.done.wait [#allocation3], 17280  }
  0x25   :  { %2168 = vsyncadd [#allocation3], 4294950016 }
  0x26   :  { %2169 = dma.done.wait [#allocation6], 30080  }
  0x27   :  { %2170 = vsyncadd [#allocation6], 4294937216  ;;  %v194_v0 = vld [vmem:[#allocation5 + $0x80] sm:$0xff]  ;;  %v195_v1 = vld [vmem:[#allocation5 + $0x88] sm:$0xff]  ;;  %vm441_vm0 = vcmask 1042432   ;;  %vm2181_vm1 = vmmov 0  }
  0x28   :  { %v226_v2 = vld [vmem:[#allocation5 + $0x180] sm:$0xff]  ;;  %v1852_v3 = vpack.c.bf16 %v195_v1, %v194_v0  ;;  %v227_v4 = vld [vmem:[#allocation5 + $0x188] sm:$0xff]  ;;  %v196_v11 = vld [vmem:[#allocation5 + $0x90] sm:$0xff]  ;;  %vm413_vm2 = vcmask 678912   ;;  %s2182_s13 = smov [#allocation7]  }
  0x29   :  { %v178_v5 = vld [vmem:[#allocation5] sm:$0xff]  ;;  %v179_v6 = vld [vmem:[#allocation5 + $0x8] sm:$0xff]  ;;  %v1884_v7 = vpack.c.bf16 %v227_v4, %v226_v2  ;;  %v197_v13 = vld [vmem:[#allocation5 + $0x98] sm:$0xff]  ;;  %s1349_s14 = sshll.u32 %s2182_s13, 4  ;;  %s1350_s14 = int_to_ptr.vmem [resolvable:$true] %s1349_s14 }
  0x2a   :  { %v1854_v8 = vpack.c.bf16 %v179_v6, %v178_v5  ;;  %v210_v9 = vld [vmem:[#allocation5 + $0x100] sm:$0xff]  ;;  %v211_v10 = vld [vmem:[#allocation5 + $0x108] sm:$0xff]  ;;  %1853 = vmatprep.subr.bf16.mxu0 %v1852_v3  ;;  %v228_v14 = vld [vmem:[#allocation5 + $0x190] sm:$0xff]  ;;  %v1856_v16 = vpack.c.bf16 %v197_v13, %v196_v11  ;;  %s2145_s15 = scalar_lea.vmem %s1350_s14, 128  ;;  %p2150_p3 = scmp.lt.s32.totalorder %s1350_s14, %s1350_s14 }
  0x2b   :  { %v1886_v12 = vpack.c.bf16 %v211_v10, %v210_v9  ;;  %v229_v15 = vld [vmem:[#allocation5 + $0x198] sm:$0xff]  ;;  %1885 = vmatprep.subr.bf16.mxu1 %v1884_v7  ;;  %v180_v18 = vld [vmem:[#allocation5 + $0x10] sm:$0xff]  ;;  %v198_v23 = vld [vmem:[#allocation5 + $0xa0] sm:$0xff]  ;;  %p2146_p2 = scmp.ne.s32.totalorder %s1350_s14, %s2145_s15  ;;  %p2151_p4 = scmp.lt.s32.totalorder %s2145_s15, %s2145_s15 }
  0x2c   :  { %1855 = vmatpush3.bf16.msra.mxu0 %v1854_v8  ;;  %v1888_v17 = vpack.c.bf16 %v229_v15, %v228_v14  ;;  %v181_v19 = vld [vmem:[#allocation5 + $0x18] sm:$0xff]  ;;  %v212_v20 = vld [vmem:[#allocation5 + $0x110] sm:$0xff]  ;;  %v199_v24 = vld [vmem:[#allocation5 + $0xa8] sm:$0xff] }
  0x2d   :  { %1887 = vmatpush3.bf16.msra.mxu1 %v1886_v12  ;;  %v1858_v21 = vpack.c.bf16 %v181_v19, %v180_v18  ;;  %v213_v22 = vld [vmem:[#allocation5 + $0x118] sm:$0xff]  ;;  %1857 = vmatprep.subr.bf16.mxu0 %v1856_v16  ;;  %v1860_v26 = vpack.c.bf16 %v199_v24, %v198_v23  ;;  %v230_v27 = vld [vmem:[#allocation5 + $0x1a0] sm:$0xff]  ;;  %v231_v28 = vld [vmem:[#allocation5 + $0x1a8] sm:$0xff]  ;;  %p2152_p5 = por %p2151_p4, %p2150_p3 }
  0x2e   :  { %1889 = vmatprep.subr.bf16.mxu1 %v1888_v17  ;;  %v1890_v25 = vpack.c.bf16 %v213_v22, %v212_v20  ;;  %v182_v29 = vld [vmem:[#allocation5 + $0x20] sm:$0xff]  ;;  %v1892_v30 = vpack.c.bf16 %v231_v28, %v230_v27  ;;  %v183_v31 = vld [vmem:[#allocation5 + $0x28] sm:$0xff]  ;;  %v200_v35 = vld [vmem:[#allocation5 + $0xb0] sm:$0xff] }
  0x2f   :  { %v214_v32 = vld [vmem:[#allocation5 + $0x120] sm:$0xff]  ;;  %v215_v33 = vld [vmem:[#allocation5 + $0x128] sm:$0xff]  ;;  %v1862_v34 = vpack.c.bf16 %v183_v31, %v182_v29  ;;  %v201_v36 = vld [vmem:[#allocation5 + $0xb8] sm:$0xff]  ;;  %p2153_p6 = pnand %p2152_p5, %p2146_p2 }
  0x30   :  { %1859 = vmatpush3.bf16.msra.mxu0 %v1858_v21  ;;  %v232_v37 = vld [vmem:[#allocation5 + $0x1b0] sm:$0xff]  ;;  %v1894_v38 = vpack.c.bf16 %v215_v33, %v214_v32  ;;  %v1864_v39 = vpack.c.bf16 %v201_v36, %v200_v35  ;;  %v233_v40 = vld [vmem:[#allocation5 + $0x1b8] sm:$0xff]  ;;  %v202_v46 = vld [vmem:[#allocation5 + $0xc0] sm:$0xff] }
  0x31   :  { %1891 = vmatpush3.bf16.msra.mxu1 %v1890_v25  ;;  %1861 = vmatprep.subr.bf16.mxu0 %v1860_v26  ;;  %v184_v41 = vld [vmem:[#allocation5 + $0x30] sm:$0xff]  ;;  %v185_v42 = vld [vmem:[#allocation5 + $0x38] sm:$0xff]  ;;  %v1896_v43 = vpack.c.bf16 %v233_v40, %v232_v37  ;;  %v203_v47 = vld [vmem:[#allocation5 + $0xc8] sm:$0xff] }
  0x32   :  { %1893 = vmatprep.subr.bf16.mxu1 %v1892_v30  ;;  %v216_v44 = vld [vmem:[#allocation5 + $0x130] sm:$0xff]  ;;  %v217_v45 = vld [vmem:[#allocation5 + $0x138] sm:$0xff]  ;;  %v234_v48 = vld [vmem:[#allocation5 + $0x1c0] sm:$0xff]  ;;  %v1866_v50 = vpack.c.bf16 %v185_v42, %v184_v41  ;;  %v1868_v52 = vpack.c.bf16 %v203_v47, %v202_v46 }
  0x33   :  { %v235_v49 = vld [vmem:[#allocation5 + $0x1c8] sm:$0xff]  ;;  %v1898_v51 = vpack.c.bf16 %v217_v45, %v216_v44  ;;  %v186_v53 = vld [vmem:[#allocation5 + $0x40] sm:$0xff]  ;;  %v204_v58 = vld [vmem:[#allocation5 + $0xd0] sm:$0xff] }
  0x34   :  { %1863 = vmatpush3.bf16.msra.mxu0 %v1862_v34  ;;  %v187_v54 = vld [vmem:[#allocation5 + $0x48] sm:$0xff]  ;;  %v218_v55 = vld [vmem:[#allocation5 + $0x140] sm:$0xff]  ;;  %v1900_v56 = vpack.c.bf16 %v235_v49, %v234_v48  ;;  %v205_v59 = vld [vmem:[#allocation5 + $0xd8] sm:$0xff] }
  0x35   :  { %1895 = vmatpush3.bf16.msra.mxu1 %v1894_v38  ;;  %1865 = vmatprep.subr.bf16.mxu0 %v1864_v39  ;;  %v219_v57 = vld [vmem:[#allocation5 + $0x148] sm:$0xff]  ;;  %v236_v60 = vld [vmem:[#allocation5 + $0x1d0] sm:$0xff]  ;;  %v237_v61 = vld [vmem:[#allocation5 + $0x1d8] sm:$0xff]  ;;  %v1870_v62 = vpack.c.bf16 %v187_v54, %v186_v53  ;;  %v1872_v0 = vpack.c.bf16 %v205_v59, %v204_v58 }
  0x36   :  { %1897 = vmatprep.subr.bf16.mxu1 %v1896_v43  ;;  %v1902_v63 = vpack.c.bf16 %v219_v57, %v218_v55  ;;  %v188_v1 = vld [vmem:[#allocation5 + $0x50] sm:$0xff]  ;;  %v189_v2 = vld [vmem:[#allocation5 + $0x58] sm:$0xff]  ;;  %v1904_v4 = vpack.c.bf16 %v237_v61, %v236_v60  ;;  %v206_v6 = vld [vmem:[#allocation5 + $0xe0] sm:$0xff] }
  0x37   :  { %v220_v3 = vld [vmem:[#allocation5 + $0x150] sm:$0xff]  ;;  %v221_v5 = vld [vmem:[#allocation5 + $0x158] sm:$0xff]  ;;  %v207_v7 = vld [vmem:[#allocation5 + $0xe8] sm:$0xff]  ;;  %v1874_v10 = vpack.c.bf16 %v189_v2, %v188_v1 }
  0x38   :  { %1867 = vmatpush3.bf16.msra.mxu0 %v1866_v50  ;;  %v238_v8 = vld [vmem:[#allocation5 + $0x1e0] sm:$0xff]  ;;  %v239_v9 = vld [vmem:[#allocation5 + $0x1e8] sm:$0xff]  ;;  %v1906_v13 = vpack.c.bf16 %v221_v5, %v220_v3  ;;  %v1876_v14 = vpack.c.bf16 %v207_v7, %v206_v6  ;;  %v44_v16 = vld [vmem:[#allocation2 + $0x8] sm:$0xff] }
  0x39   :  { %1899 = vmatpush3.bf16.msra.mxu1 %v1898_v51  ;;  %1869 = vmatprep.subr.bf16.mxu0 %v1868_v52  ;;  %v190_v11 = vld [vmem:[#allocation5 + $0x60] sm:$0xff]  ;;  %v191_v12 = vld [vmem:[#allocation5 + $0x68] sm:$0xff]  ;;  %v1908_v18 = vpack.c.bf16 %v239_v9, %v238_v8  ;;  %v208_v20 = vld [vmem:[#allocation5 + $0xf0] sm:$0xff] }
  0x3a   :  { %1901 = vmatprep.subr.bf16.mxu1 %v1900_v56  ;;  %v222_v15 = vld [vmem:[#allocation5 + $0x160] sm:$0xff]  ;;  %v223_v19 = vld [vmem:[#allocation5 + $0x168] sm:$0xff]  ;;  %v209_v21 = vld [vmem:[#allocation5 + $0xf8] sm:$0xff]  ;;  %509 = vmatprep.mubr.f32.mxu0 %v44_v16  ;;  %v1878_v24 = vpack.c.bf16 %v191_v12, %v190_v11 }
  0x3b   :  { %v46_v17 = vld [vmem:[#allocation2 + $0x18] sm:$0xff]  ;;  %v240_v22 = vld [vmem:[#allocation5 + $0x1f0] sm:$0xff]  ;;  %v241_v23 = vld [vmem:[#allocation5 + $0x1f8] sm:$0xff]  ;;  %v1910_v25 = vpack.c.bf16 %v223_v19, %v222_v15  ;;  %v1880_v26 = vpack.c.bf16 %v209_v21, %v208_v20 }
  0x3c   :  { %1871 = vmatpush3.bf16.msra.mxu0 %v1870_v62  ;;  %619 = vmatprep.mubr.f32.mxu1 %v46_v17  ;;  %v192_v27 = vld [vmem:[#allocation5 + $0x70] sm:$0xff]  ;;  %v193_v28 = vld [vmem:[#allocation5 + $0x78] sm:$0xff]  ;;  %v1912_v30 = vpack.c.bf16 %v241_v23, %v240_v22  ;;  %v258_v32 = vld [vmem:[#allocation5 + $0x280] sm:$0xff] }
  0x3d   :  { %1903 = vmatpush3.bf16.msra.mxu1 %v1902_v63  ;;  %1873 = vmatprep.subr.bf16.mxu0 %v1872_v0  ;;  %v224_v29 = vld [vmem:[#allocation5 + $0x170] sm:$0xff]  ;;  %v225_v31 = vld [vmem:[#allocation5 + $0x178] sm:$0xff]  ;;  %v259_v33 = vld [vmem:[#allocation5 + $0x288] sm:$0xff]  ;;  %v1882_v36 = vpack.c.bf16 %v193_v28, %v192_v27 }
  0x3e   :  { %1905 = vmatprep.subr.bf16.mxu1 %v1904_v4  ;;  %v290_v34 = vld [vmem:[#allocation5 + $0x380] sm:$0xff]  ;;  %v291_v35 = vld [vmem:[#allocation5 + $0x388] sm:$0xff]  ;;  %v1914_v37 = vpack.c.bf16 %v225_v31, %v224_v29  ;;  %v1916_v38 = vpack.c.bf16 %v259_v33, %v258_v32  ;;  %v260_v41 = vld [vmem:[#allocation5 + $0x290] sm:$0xff] }
  0x3f   :  { %v242_v39 = vld [vmem:[#allocation5 + $0x200] sm:$0xff]  ;;  %v243_v40 = vld [vmem:[#allocation5 + $0x208] sm:$0xff]  ;;  %v1948_v42 = vpack.c.bf16 %v291_v35, %v290_v34  ;;  %v261_v43 = vld [vmem:[#allocation5 + $0x298] sm:$0xff] }
  0x40   :  { %1875 = vmatpush3.bf16.msra.mxu0 %v1874_v10  ;;  %v274_v44 = vld [vmem:[#allocation5 + $0x300] sm:$0xff]  ;;  %v275_v45 = vld [vmem:[#allocation5 + $0x308] sm:$0xff]  ;;  %v1918_v47 = vpack.c.bf16 %v243_v40, %v242_v39  ;;  %v292_v48 = vld [vmem:[#allocation5 + $0x390] sm:$0xff]  ;;  %v1920_v55 = vpack.c.bf16 %v261_v43, %v260_v41 }
  0x41   :  { %1907 = vmatpush3.bf16.msra.mxu1 %v1906_v13  ;;  %1877 = vmatprep.subr.bf16.mxu0 %v1876_v14  ;;  %v43_v46 = vld [vmem:[#allocation2] sm:$0xff]  ;;  %v293_v49 = vld [vmem:[#allocation5 + $0x398] sm:$0xff]  ;;  %v244_v51 = vld [vmem:[#allocation5 + $0x210] sm:$0xff]  ;;  %v1950_v56 = vpack.c.bf16 %v275_v45, %v274_v44 }
  0x42   :  { %1909 = vmatprep.subr.bf16.mxu1 %v1908_v18  ;;  %v45_v50 = vld [vmem:[#allocation2 + $0x10] sm:$0xff]  ;;  %v59_v53 = vld [vmem:[#allocation2 + $0x80] sm:$0xff]  ;;  %v262_v57 = vld [vmem:[#allocation5 + $0x2a0] sm:$0xff]  ;;  %v1952_v59 = vpack.c.bf16 %v293_v49, %v292_v48 }
  0x43   :  { %v245_v52 = vld [vmem:[#allocation5 + $0x218] sm:$0xff]  ;;  %v263_v58 = vld [vmem:[#allocation5 + $0x2a8] sm:$0xff]  ;;  %v276_v60 = vld [vmem:[#allocation5 + $0x310] sm:$0xff] }
  0x44   :  { %1879 = vmatpush3.bf16.msra.mxu0 %v1878_v24  ;;  %v61_v54 = vld [vmem:[#allocation2 + $0x90] sm:$0xff]  ;;  %v58_v62 = vld [vmem:[#allocation2 + $0x78] sm:$0xff]  ;;  %v1922_v63 = vpack.c.bf16 %v245_v52, %v244_v51  ;;  %v295_v1 = vld [vmem:[#allocation5 + $0x3a8] sm:$0xff]  ;;  %v1924_v7 = vpack.c.bf16 %v263_v58, %v262_v57 }
  0x45   :  { %1911 = vmatpush3.bf16.msra.mxu1 %v1910_v25  ;;  %1881 = vmatprep.subr.bf16.mxu0 %v1880_v26  ;;  %v277_v61 = vld [vmem:[#allocation5 + $0x318] sm:$0xff]  ;;  %v294_v0 = vld [vmem:[#allocation5 + $0x3a0] sm:$0xff]  ;;  %v60_v2 = vld [vmem:[#allocation2 + $0x88] sm:$0xff] }
  0x46   :  { %1913 = vmatprep.subr.bf16.mxu1 %v1912_v30  ;;  %v246_v3 = vld [vmem:[#allocation5 + $0x220] sm:$0xff]  ;;  %v247_v4 = vld [vmem:[#allocation5 + $0x228] sm:$0xff]  ;;  %v76_v6 = vld [vmem:[#allocation2 + $0x108] sm:$0xff]  ;;  %v1954_v8 = vpack.c.bf16 %v277_v61, %v276_v60  ;;  %v1956_v11 = vpack.c.bf16 %v295_v1, %v294_v0 }
  0x47   :  { %v74_v5 = vld [vmem:[#allocation2 + $0xf8] sm:$0xff]  ;;  %v264_v9 = vld [vmem:[#allocation5 + $0x2b0] sm:$0xff]  ;;  %v265_v10 = vld [vmem:[#allocation5 + $0x2b8] sm:$0xff]  ;;  %v1926_v15 = vpack.c.bf16 %v247_v4, %v246_v3 }
  0x48   :  { %1883 = vmatpush3.bf16.msra.mxu0 %v1882_v36  ;;  %v278_v12 = vld [vmem:[#allocation5 + $0x320] sm:$0xff]  ;;  %v279_v13 = vld [vmem:[#allocation5 + $0x328] sm:$0xff]  ;;  %v73_v14 = vld [vmem:[#allocation2 + $0xf0] sm:$0xff]  ;;  %v1928_v21 = vpack.c.bf16 %v265_v10, %v264_v9 }
  0x49   :  { %1915 = vmatpush3.bf16.msra.mxu1 %v1914_v37  ;;  %1917 = vmatprep.subr.bf16.mxu0 %v1916_v38  ;;  %v296_v16 = vld [vmem:[#allocation5 + $0x3b0] sm:$0xff]  ;;  %v297_v17 = vld [vmem:[#allocation5 + $0x3b8] sm:$0xff]  ;;  %v75_v18 = vld [vmem:[#allocation2 + $0x100] sm:$0xff]  ;;  %v1958_v24 = vpack.c.bf16 %v279_v13, %v278_v12 }
  0x4a   :  { %1949 = vmatprep.subr.bf16.mxu1 %v1948_v42  ;;  %v89_v19 = vld [vmem:[#allocation2 + $0x170] sm:$0xff]  ;;  %v91_v20 = vld [vmem:[#allocation2 + $0x180] sm:$0xff]  ;;  %v248_v22 = vld [vmem:[#allocation5 + $0x230] sm:$0xff]  ;;  %v1960_v27 = vpack.c.bf16 %v297_v17, %v296_v16 }
  0x4b   :  { %510 = vmatmul.mubr.f32.vlgmr.msra.gmra.mrb[0].mxu0 %v43_v46  ;;  %v249_v23 = vld [vmem:[#allocation5 + $0x238] sm:$0xff]  ;;  %v266_v25 = vld [vmem:[#allocation5 + $0x2c0] sm:$0xff]  ;;  %v267_v26 = vld [vmem:[#allocation5 + $0x2c8] sm:$0xff] }
  0x4c   :  { %620 = vmatmul.mubr.f32.vlgmr.msra.gmra.mrb[0].mxu1 %v45_v50  ;;  %1919 = vmatpush3.bf16.msra.mxu0 %v1918_v47  ;;  %v280_v28 = vld [vmem:[#allocation5 + $0x330] sm:$0xff]  ;;  %v281_v29 = vld [vmem:[#allocation5 + $0x338] sm:$0xff]  ;;  %v298_v31 = vld [vmem:[#allocation5 + $0x3c0] sm:$0xff]  ;;  %v1930_v36 = vpack.c.bf16 %v249_v23, %v248_v22  ;;  %v1932_v37 = vpack.c.bf16 %v267_v26, %v266_v25 }
  0x4d   :  { %514 = vmatprep.mubr.f32.mxu0 %v59_v53  ;;  %624 = vmatprep.mubr.f32.mxu1 %v61_v54  ;;  %v88_v30 = vld [vmem:[#allocation2 + $0x168] sm:$0xff]  ;;  %v299_v32 = vld [vmem:[#allocation5 + $0x3c8] sm:$0xff]  ;;  %v90_v33 = vld [vmem:[#allocation2 + $0x178] sm:$0xff]  ;;  %v1962_v40 = vpack.c.bf16 %v281_v29, %v280_v28 }
  0x4e   :  { %1921 = vmatprep.subr.bf16.mxu0 %v1920_v55  ;;  %1951 = vmatpush3.bf16.msra.mxu1 %v1950_v56  ;;  %v104_v34 = vld [vmem:[#allocation2 + $0x1e8] sm:$0xff]  ;;  %v106_v35 = vld [vmem:[#allocation2 + $0x1f8] sm:$0xff]  ;;  %v251_v39 = vld [vmem:[#allocation5 + $0x248] sm:$0xff]  ;;  %v1964_v42 = vpack.c.bf16 %v299_v32, %v298_v31 }
  0x4f   :  { %515 = vmatmul.mubr.f32.gmra.mrb[2].mxu0 %v58_v62  ;;  %1953 = vmatprep.subr.bf16.mxu1 %v1952_v59  ;;  %v250_v38 = vld [vmem:[#allocation5 + $0x240] sm:$0xff]  ;;  %v268_v41 = vld [vmem:[#allocation5 + $0x2d0] sm:$0xff]  ;;  %v269_v43 = vld [vmem:[#allocation5 + $0x2d8] sm:$0xff] }
  0x50   :  { %625 = vmatmul.mubr.f32.gmra.mrb[2].mxu1 %v60_v2  ;;  %1923 = vmatpush3.bf16.msra.mxu0 %v1922_v63  ;;  %v282_v44 = vld [vmem:[#allocation5 + $0x340] sm:$0xff]  ;;  %v283_v45 = vld [vmem:[#allocation5 + $0x348] sm:$0xff]  ;;  %v300_v47 = vld [vmem:[#allocation5 + $0x3d0] sm:$0xff]  ;;  %v1934_v52 = vpack.c.bf16 %v251_v39, %v250_v38  ;;  %v1936_v53 = vpack.c.bf16 %v269_v43, %v268_v41 }
  0x51   :  { %519 = vmatprep.mubr.f32.mxu0 %v74_v5  ;;  %629 = vmatprep.mubr.f32.mxu1 %v76_v6  ;;  %v103_v46 = vld [vmem:[#allocation2 + $0x1e0] sm:$0xff]  ;;  %v301_v48 = vld [vmem:[#allocation5 + $0x3d8] sm:$0xff]  ;;  %v1966_v54 = vpack.c.bf16 %v283_v45, %v282_v44  ;;  %v252_v55 = vld [vmem:[#allocation5 + $0x250] sm:$0xff] }
  0x52   :  { %1925 = vmatprep.subr.bf16.mxu0 %v1924_v7  ;;  %1955 = vmatpush3.bf16.msra.mxu1 %v1954_v8  ;;  %v105_v49 = vld [vmem:[#allocation2 + $0x1f0] sm:$0xff]  ;;  %v119_v50 = vld [vmem:[#allocation2 + $0x260] sm:$0xff]  ;;  %v270_v57 = vld [vmem:[#allocation5 + $0x2e0] sm:$0xff]  ;;  %v1968_v58 = vpack.c.bf16 %v301_v48, %v300_v47 }
  0x53   :  { %520 = vmatmul.mubr.f32.gmra.mrb[4].mxu0 %v73_v14  ;;  %1957 = vmatprep.subr.bf16.mxu1 %v1956_v11  ;;  %v121_v51 = vld [vmem:[#allocation2 + $0x270] sm:$0xff]  ;;  %v271_v59 = vld [vmem:[#allocation5 + $0x2e8] sm:$0xff]  ;;  %v284_v60 = vld [vmem:[#allocation5 + $0x350] sm:$0xff] }
  0x54   :  { %630 = vmatmul.mubr.f32.gmra.mrb[4].mxu1 %v75_v18  ;;  %1927 = vmatpush3.bf16.msra.mxu0 %v1926_v15  ;;  %v253_v56 = vld [vmem:[#allocation5 + $0x258] sm:$0xff]  ;;  %v118_v62 = vld [vmem:[#allocation2 + $0x258] sm:$0xff]  ;;  %v303_v0 = vld [vmem:[#allocation5 + $0x3e8] sm:$0xff]  ;;  %v1940_v5 = vpack.c.bf16 %v271_v59, %v270_v57 }
  0x55   :  { %524 = vmatprep.mubr.f32.mxu0 %v89_v19  ;;  %634 = vmatprep.mubr.f32.mxu1 %v91_v20  ;;  %v285_v61 = vld [vmem:[#allocation5 + $0x358] sm:$0xff]  ;;  %v302_v63 = vld [vmem:[#allocation5 + $0x3e0] sm:$0xff]  ;;  %v120_v1 = vld [vmem:[#allocation2 + $0x268] sm:$0xff]  ;;  %v1938_v4 = vpack.c.bf16 %v253_v56, %v252_v55 }
  0x56   :  { %1929 = vmatprep.subr.bf16.mxu0 %v1928_v21  ;;  %1959 = vmatpush3.bf16.msra.mxu1 %v1958_v24  ;;  %v134_v2 = vld [vmem:[#allocation2 + $0x2d8] sm:$0xff]  ;;  %v136_v3 = vld [vmem:[#allocation2 + $0x2e8] sm:$0xff]  ;;  %v1970_v6 = vpack.c.bf16 %v285_v61, %v284_v60  ;;  %v255_v8 = vld [vmem:[#allocation5 + $0x268] sm:$0xff]  ;;  %v1972_v10 = vpack.c.bf16 %v303_v0, %v302_v63 }
  0x57   :  { %525 = vmatmul.mubr.f32.gmra.mrb[6].mxu0 %v88_v30  ;;  %1961 = vmatprep.subr.bf16.mxu1 %v1960_v27  ;;  %v254_v7 = vld [vmem:[#allocation5 + $0x260] sm:$0xff]  ;;  %v287_v11 = vld [vmem:[#allocation5 + $0x368] sm:$0xff]  ;;  %v272_v12 = vld [vmem:[#allocation5 + $0x2f0] sm:$0xff] }
  0x58   :  { %635 = vmatmul.mubr.f32.gmra.mrb[6].mxu1 %v90_v33  ;;  %529 = vmatprep.mubr.f32.mxu0 %v104_v34  ;;  %v286_v9 = vld [vmem:[#allocation5 + $0x360] sm:$0xff]  ;;  %v273_v13 = vld [vmem:[#allocation5 + $0x2f8] sm:$0xff]  ;;  %v304_v15 = vld [vmem:[#allocation5 + $0x3f0] sm:$0xff]  ;;  %v1942_v20 = vpack.c.bf16 %v255_v8, %v254_v7 }
  0x59   :  { %639 = vmatprep.mubr.f32.mxu1 %v106_v35  ;;  %1931 = vmatpush3.bf16.msra.mxu0 %v1930_v36  ;;  %v133_v14 = vld [vmem:[#allocation2 + $0x2d0] sm:$0xff]  ;;  %v135_v17 = vld [vmem:[#allocation2 + $0x2e0] sm:$0xff]  ;;  %v1974_v21 = vpack.c.bf16 %v287_v11, %v286_v9  ;;  %v1944_v22 = vpack.c.bf16 %v273_v13, %v272_v12  ;;  %v256_v23 = vld [vmem:[#allocation5 + $0x270] sm:$0xff] }
  0x5a   :  { %1933 = vmatprep.subr.bf16.mxu0 %v1932_v37  ;;  %1963 = vmatpush3.bf16.msra.mxu1 %v1962_v40  ;;  %v305_v16 = vld [vmem:[#allocation5 + $0x3f8] sm:$0xff]  ;;  %v151_v19 = vld [vmem:[#allocation2 + $0x360] sm:$0xff]  ;;  %v288_v25 = vld [vmem:[#allocation5 + $0x370] sm:$0xff] }
  0x5b   :  { %530 = vmatmul.mubr.f32.gmra.mrb[8].mxu0 %v103_v46  ;;  %1965 = vmatprep.subr.bf16.mxu1 %v1964_v42  ;;  %v149_v18 = vld [vmem:[#allocation2 + $0x350] sm:$0xff]  ;;  %v1976_v26 = vpack.c.bf16 %v305_v16, %v304_v15  ;;  %v322_v28 = vld [vmem:[#allocation5 + $0x480] sm:$0xff]  ;;  %v323_v29 = vld [vmem:[#allocation5 + $0x488] sm:$0xff] }
  0x5c   :  { %640 = vmatmul.mubr.f32.gmra.mrb[8].mxu1 %v105_v49  ;;  %534 = vmatprep.mubr.f32.mxu0 %v119_v50  ;;  %v257_v24 = vld [vmem:[#allocation5 + $0x278] sm:$0xff]  ;;  %v148_v30 = vld [vmem:[#allocation2 + $0x348] sm:$0xff]  ;;  %v354_v31 = vld [vmem:[#allocation5 + $0x580] sm:$0xff]  ;;  %v1980_v38 = vpack.c.bf16 %v323_v29, %v322_v28 }
  0x5d   :  { %644 = vmatprep.mubr.f32.mxu1 %v121_v51  ;;  %1935 = vmatpush3.bf16.msra.mxu0 %v1934_v52  ;;  %v289_v27 = vld [vmem:[#allocation5 + $0x378] sm:$0xff]  ;;  %v355_v32 = vld [vmem:[#allocation5 + $0x588] sm:$0xff]  ;;  %v150_v33 = vld [vmem:[#allocation2 + $0x358] sm:$0xff]  ;;  %v1946_v35 = vpack.c.bf16 %v257_v24, %v256_v23 }
  0x5e   :  { %1937 = vmatprep.subr.bf16.mxu0 %v1936_v53  ;;  %1967 = vmatpush3.bf16.msra.mxu1 %v1966_v54  ;;  %v164_v34 = vld [vmem:[#allocation2 + $0x3c8] sm:$0xff]  ;;  %v166_v36 = vld [vmem:[#allocation2 + $0x3d8] sm:$0xff]  ;;  %v1978_v37 = vpack.c.bf16 %v289_v27, %v288_v25  ;;  %v2012_v39 = vpack.c.bf16 %v355_v32, %v354_v31  ;;  %v163_v40 = vld [vmem:[#allocation2 + $0x3c0] sm:$0xff] }
  0x5f   :  { %535 = vmatmul.mubr.f32.gmra.mrb[10].mxu0 %v118_v62  ;;  %1969 = vmatprep.subr.bf16.mxu1 %v1968_v58  ;;  %v165_v41 = vld [vmem:[#allocation2 + $0x3d0] sm:$0xff]  ;;  %v48_v42 = vld [vmem:[#allocation2 + $0x28] sm:$0xff]  ;;  %v306_v43 = vld [vmem:[#allocation5 + $0x400] sm:$0xff] }
  0x60   :  { %645 = vmatmul.mubr.f32.gmra.mrb[10].mxu1 %v120_v1  ;;  %539 = vmatprep.mubr.f32.mxu0 %v134_v2  ;;  %v307_v44 = vld [vmem:[#allocation5 + $0x408] sm:$0xff]  ;;  %v50_v45 = vld [vmem:[#allocation2 + $0x38] sm:$0xff]  ;;  %v324_v46 = vld [vmem:[#allocation5 + $0x490] sm:$0xff] }
  0x61   :  { %649 = vmatprep.mubr.f32.mxu1 %v136_v3  ;;  %1939 = vmatpush3.bf16.msra.mxu0 %v1938_v4  ;;  %v325_v47 = vld [vmem:[#allocation5 + $0x498] sm:$0xff]  ;;  %v338_v48 = vld [vmem:[#allocation5 + $0x500] sm:$0xff]  ;;  %v339_v49 = vld [vmem:[#allocation5 + $0x508] sm:$0xff]  ;;  %v1982_v51 = vpack.c.bf16 %v307_v44, %v306_v43 }
  0x62   :  { %1941 = vmatprep.subr.bf16.mxu0 %v1940_v5  ;;  %1971 = vmatpush3.bf16.msra.mxu1 %v1970_v6  ;;  %v47_v50 = vld [vmem:[#allocation2 + $0x20] sm:$0xff]  ;;  %v356_v52 = vld [vmem:[#allocation5 + $0x590] sm:$0xff]  ;;  %v357_v53 = vld [vmem:[#allocation5 + $0x598] sm:$0xff]  ;;  %v1984_v59 = vpack.c.bf16 %v325_v47, %v324_v46  ;;  %v2014_v60 = vpack.c.bf16 %v339_v49, %v338_v48 }
  0x63   :  { %540 = vmatmul.mubr.f32.gmra.mrb[12].mxu0 %v133_v14  ;;  %1973 = vmatprep.subr.bf16.mxu1 %v1972_v10  ;;  %v49_v54 = vld [vmem:[#allocation2 + $0x30] sm:$0xff]  ;;  %v308_v55 = vld [vmem:[#allocation5 + $0x410] sm:$0xff]  ;;  %v63_v57 = vld [vmem:[#allocation2 + $0xa0] sm:$0xff]  ;;  %v2016_v63 = vpack.c.bf16 %v357_v53, %v356_v52 }
  0x64   :  { %650 = vmatmul.mubr.f32.gmra.mrb[12].mxu1 %v135_v17  ;;  %544 = vmatprep.mubr.f32.mxu0 %v149_v18  ;;  %v309_v56 = vld [vmem:[#allocation5 + $0x418] sm:$0xff]  ;;  %v326_v61 = vld [vmem:[#allocation5 + $0x4a0] sm:$0xff]  ;;  %v327_v62 = vld [vmem:[#allocation5 + $0x4a8] sm:$0xff] }
  0x65   :  { %654 = vmatprep.mubr.f32.mxu1 %v151_v19  ;;  %1943 = vmatpush3.bf16.msra.mxu0 %v1942_v20  ;;  %v65_v58 = vld [vmem:[#allocation2 + $0xb0] sm:$0xff]  ;;  %v340_v0 = vld [vmem:[#allocation5 + $0x510] sm:$0xff]  ;;  %v62_v2 = vld [vmem:[#allocation2 + $0x98] sm:$0xff]  ;;  %v1986_v3 = vpack.c.bf16 %v309_v56, %v308_v55  ;;  %v1988_v11 = vpack.c.bf16 %v327_v62, %v326_v61 }
  0x66   :  { %1975 = vmatpush3.bf16.msra.mxu1 %v1974_v21  ;;  %1945 = vmatprep.subr.bf16.mxu0 %v1944_v22  ;;  %v341_v1 = vld [vmem:[#allocation5 + $0x518] sm:$0xff]  ;;  %v358_v4 = vld [vmem:[#allocation5 + $0x5a0] sm:$0xff]  ;;  %v359_v5 = vld [vmem:[#allocation5 + $0x5a8] sm:$0xff] }
  0x67   :  { %545 = vmatmul.mubr.f32.gmra.mrb[14].mxu0 %v148_v30  ;;  %1977 = vmatprep.subr.bf16.mxu1 %v1976_v26  ;;  %v64_v6 = vld [vmem:[#allocation2 + $0xa8] sm:$0xff]  ;;  %v310_v7 = vld [vmem:[#allocation5 + $0x420] sm:$0xff]  ;;  %v311_v8 = vld [vmem:[#allocation5 + $0x428] sm:$0xff]  ;;  %v2018_v12 = vpack.c.bf16 %v341_v1, %v340_v0  ;;  %v2020_v15 = vpack.c.bf16 %v359_v5, %v358_v4 }
  0x68   :  { %655 = vmatmul.mubr.f32.gmra.mrb[14].mxu1 %v150_v33  ;;  %549 = vmatprep.mubr.f32.mxu0 %v164_v34  ;;  %v78_v9 = vld [vmem:[#allocation2 + $0x118] sm:$0xff]  ;;  %v80_v10 = vld [vmem:[#allocation2 + $0x128] sm:$0xff]  ;;  %v329_v14 = vld [vmem:[#allocation5 + $0x4b8] sm:$0xff]  ;;  %v1990_v19 = vpack.c.bf16 %v311_v8, %v310_v7 }
  0x69   :  { %659 = vmatprep.mubr.f32.mxu1 %v166_v36  ;;  %1947 = vmatpush3.bf16.msra.mxu0 %v1946_v35  ;;  %v328_v13 = vld [vmem:[#allocation5 + $0x4b0] sm:$0xff]  ;;  %v342_v16 = vld [vmem:[#allocation5 + $0x520] sm:$0xff]  ;;  %v343_v17 = vld [vmem:[#allocation5 + $0x528] sm:$0xff] }
  0x6a   :  { %1979 = vmatpush3.bf16.msra.mxu1 %v1978_v37  ;;  %1981 = vmatprep.subr.bf16.mxu0 %v1980_v38  ;;  %v77_v18 = vld [vmem:[#allocation2 + $0x110] sm:$0xff]  ;;  %v360_v20 = vld [vmem:[#allocation5 + $0x5b0] sm:$0xff]  ;;  %v79_v22 = vld [vmem:[#allocation2 + $0x120] sm:$0xff]  ;;  %v1992_v25 = vpack.c.bf16 %v329_v14, %v328_v13  ;;  %v2022_v28 = vpack.c.bf16 %v343_v17, %v342_v16 }
  0x6b   :  { %550 = vmatmul.mubr.f32.gmra.mrb[16].mxu0 %v163_v40  ;;  %2013 = vmatprep.subr.bf16.mxu1 %v2012_v39  ;;  %v361_v21 = vld [vmem:[#allocation5 + $0x5b8] sm:$0xff]  ;;  %v95_v24 = vld [vmem:[#allocation2 + $0x1a0] sm:$0xff]  ;;  %v312_v26 = vld [vmem:[#allocation5 + $0x430] sm:$0xff] }
  0x6c   :  { %660 = vmatmul.mubr.f32.gmra.mrb[16].mxu1 %v165_v41  ;;  %729 = vmatprep.mubr.f32.mxu0 %v48_v42  ;;  %v93_v23 = vld [vmem:[#allocation2 + $0x190] sm:$0xff]  ;;  %v330_v29 = vld [vmem:[#allocation5 + $0x4c0] sm:$0xff]  ;;  %v331_v30 = vld [vmem:[#allocation5 + $0x4c8] sm:$0xff]  ;;  %v2024_v31 = vpack.c.bf16 %v361_v21, %v360_v20 }
  0x6d   :  { %839 = vmatprep.mubr.f32.mxu1 %v50_v45  ;;  %v313_v27 = vld [vmem:[#allocation5 + $0x438] sm:$0xff]  ;;  %v344_v32 = vld [vmem:[#allocation5 + $0x530] sm:$0xff]  ;;  %v362_v35 = vld [vmem:[#allocation5 + $0x5c0] sm:$0xff]  ;;  %v1996_v41 = vpack.c.bf16 %v331_v30, %v330_v29 }
  0x6e   :  { %v345_v33 = vld [vmem:[#allocation5 + $0x538] sm:$0xff]  ;;  %v92_v34 = vld [vmem:[#allocation2 + $0x188] sm:$0xff]  ;;  %v363_v36 = vld [vmem:[#allocation5 + $0x5c8] sm:$0xff]  ;;  %v1994_v39 = vpack.c.bf16 %v313_v27, %v312_v26 }
  0x6f   :  { %730 = vmatmul.mubr.f32.vlgmr.msra.gmra.mrb[18].mxu0 %v47_v50  ;;  %v94_v37 = vld [vmem:[#allocation2 + $0x198] sm:$0xff]  ;;  %v108_v38 = vld [vmem:[#allocation2 + $0x208] sm:$0xff]  ;;  %v315_v43 = vld [vmem:[#allocation5 + $0x448] sm:$0xff]  ;;  %v2026_v44 = vpack.c.bf16 %v345_v33, %v344_v32  ;;  %v2028_v46 = vpack.c.bf16 %v363_v36, %v362_v35 }
  0x70   :  { %1983 = vmatpush3.bf16.msra.mxu0 %v1982_v51  ;;  %840 = vmatmul.mubr.f32.vlgmr.msra.gmra.mrb[18].mxu1 %v49_v54  ;;  %v110_v40 = vld [vmem:[#allocation2 + $0x218] sm:$0xff]  ;;  %v332_v45 = vld [vmem:[#allocation5 + $0x4d0] sm:$0xff]  ;;  %v333_v47 = vld [vmem:[#allocation5 + $0x4d8] sm:$0xff] }
  0x71   :  { %734 = vmatprep.mubr.f32.mxu0 %v63_v57  ;;  %844 = vmatprep.mubr.f32.mxu1 %v65_v58  ;;  %v314_v42 = vld [vmem:[#allocation5 + $0x440] sm:$0xff]  ;;  %v347_v49 = vld [vmem:[#allocation5 + $0x548] sm:$0xff]  ;;  %v364_v51 = vld [vmem:[#allocation5 + $0x5d0] sm:$0xff]  ;;  %v2000_v57 = vpack.c.bf16 %v333_v47, %v332_v45 }
  0x72   :  { %1985 = vmatprep.subr.bf16.mxu0 %v1984_v59  ;;  %2015 = vmatpush3.bf16.msra.mxu1 %v2014_v60  ;;  %v346_v48 = vld [vmem:[#allocation5 + $0x540] sm:$0xff]  ;;  %v107_v50 = vld [vmem:[#allocation2 + $0x200] sm:$0xff]  ;;  %v365_v52 = vld [vmem:[#allocation5 + $0x5d8] sm:$0xff]  ;;  %v1998_v55 = vpack.c.bf16 %v315_v43, %v314_v42 }
  0x73   :  { %735 = vmatmul.mubr.f32.gmra.mrb[20].mxu0 %v62_v2  ;;  %2017 = vmatprep.subr.bf16.mxu1 %v2016_v63  ;;  %v109_v53 = vld [vmem:[#allocation2 + $0x210] sm:$0xff]  ;;  %v123_v54 = vld [vmem:[#allocation2 + $0x280] sm:$0xff]  ;;  %v2030_v58 = vpack.c.bf16 %v347_v49, %v346_v48  ;;  %v316_v59 = vld [vmem:[#allocation5 + $0x450] sm:$0xff]  ;;  %v2032_v62 = vpack.c.bf16 %v365_v52, %v364_v51  ;;  %v2179_v49 = vmov 0.0|0.0  }
  0x74   :  { %845 = vmatmul.mubr.f32.gmra.mrb[20].mxu1 %v64_v6  ;;  %1987 = vmatpush3.bf16.msra.mxu0 %v1986_v3  ;;  %v125_v56 = vld [vmem:[#allocation2 + $0x290] sm:$0xff]  ;;  %v334_v61 = vld [vmem:[#allocation5 + $0x4e0] sm:$0xff]  ;;  %v335_v63 = vld [vmem:[#allocation5 + $0x4e8] sm:$0xff] }
  0x75   :  { %739 = vmatprep.mubr.f32.mxu0 %v78_v9  ;;  %849 = vmatprep.mubr.f32.mxu1 %v80_v10  ;;  %v317_v60 = vld [vmem:[#allocation5 + $0x458] sm:$0xff]  ;;  %v348_v0 = vld [vmem:[#allocation5 + $0x550] sm:$0xff]  ;;  %v122_v2 = vld [vmem:[#allocation2 + $0x278] sm:$0xff]  ;;  %v2004_v9 = vpack.c.bf16 %v335_v63, %v334_v61 }
  0x76   :  { %1989 = vmatprep.subr.bf16.mxu0 %v1988_v11  ;;  %2019 = vmatpush3.bf16.msra.mxu1 %v2018_v12  ;;  %v349_v1 = vld [vmem:[#allocation5 + $0x558] sm:$0xff]  ;;  %v366_v3 = vld [vmem:[#allocation5 + $0x5e0] sm:$0xff]  ;;  %v367_v4 = vld [vmem:[#allocation5 + $0x5e8] sm:$0xff]  ;;  %v2002_v7 = vpack.c.bf16 %v317_v60, %v316_v59 }
  0x77   :  { %740 = vmatmul.mubr.f32.gmra.mrb[22].mxu0 %v77_v18  ;;  %2021 = vmatprep.subr.bf16.mxu1 %v2020_v15  ;;  %v124_v5 = vld [vmem:[#allocation2 + $0x288] sm:$0xff]  ;;  %v138_v6 = vld [vmem:[#allocation2 + $0x2f8] sm:$0xff]  ;;  %v2034_v10 = vpack.c.bf16 %v349_v1, %v348_v0  ;;  %v319_v12 = vld [vmem:[#allocation5 + $0x468] sm:$0xff]  ;;  %v2036_v14 = vpack.c.bf16 %v367_v4, %v366_v3 }
  0x78   :  { %850 = vmatmul.mubr.f32.gmra.mrb[22].mxu1 %v79_v22  ;;  %1991 = vmatpush3.bf16.msra.mxu0 %v1990_v19  ;;  %v140_v8 = vld [vmem:[#allocation2 + $0x308] sm:$0xff]  ;;  %v318_v11 = vld [vmem:[#allocation5 + $0x460] sm:$0xff]  ;;  %v351_v15 = vld [vmem:[#allocation5 + $0x568] sm:$0xff] }
  0x79   :  { %744 = vmatprep.mubr.f32.mxu0 %v93_v23  ;;  %854 = vmatprep.mubr.f32.mxu1 %v95_v24  ;;  %v350_v13 = vld [vmem:[#allocation5 + $0x560] sm:$0xff]  ;;  %v336_v16 = vld [vmem:[#allocation5 + $0x4f0] sm:$0xff]  ;;  %v337_v17 = vld [vmem:[#allocation5 + $0x4f8] sm:$0xff]  ;;  %v2006_v23 = vpack.c.bf16 %v319_v12, %v318_v11 }
  0x7a   :  { %1993 = vmatprep.subr.bf16.mxu0 %v1992_v25  ;;  %2023 = vmatpush3.bf16.msra.mxu1 %v2022_v28  ;;  %v137_v18 = vld [vmem:[#allocation2 + $0x2f0] sm:$0xff]  ;;  %v368_v19 = vld [vmem:[#allocation5 + $0x5f0] sm:$0xff]  ;;  %v139_v21 = vld [vmem:[#allocation2 + $0x300] sm:$0xff]  ;;  %v2038_v25 = vpack.c.bf16 %v351_v15, %v350_v13  ;;  %v2008_v26 = vpack.c.bf16 %v337_v17, %v336_v16 }
  0x7b   :  { %745 = vmatmul.mubr.f32.gmra.mrb[24].mxu0 %v92_v34  ;;  %2025 = vmatprep.subr.bf16.mxu1 %v2024_v31  ;;  %v369_v20 = vld [vmem:[#allocation5 + $0x5f8] sm:$0xff]  ;;  %v155_v24 = vld [vmem:[#allocation2 + $0x380] sm:$0xff]  ;;  %v320_v27 = vld [vmem:[#allocation5 + $0x470] sm:$0xff] }
  0x7c   :  { %855 = vmatmul.mubr.f32.gmra.mrb[24].mxu1 %v94_v37  ;;  %749 = vmatprep.mubr.f32.mxu0 %v108_v38  ;;  %v153_v22 = vld [vmem:[#allocation2 + $0x370] sm:$0xff]  ;;  %v352_v29 = vld [vmem:[#allocation5 + $0x570] sm:$0xff]  ;;  %v2040_v30 = vpack.c.bf16 %v369_v20, %v368_v19  ;;  %v386_v32 = vld [vmem:[#allocation5 + $0x680] sm:$0xff] }
  0x7d   :  { %1995 = vmatpush3.bf16.msra.mxu0 %v1994_v39  ;;  %859 = vmatprep.mubr.f32.mxu1 %v110_v40  ;;  %v321_v28 = vld [vmem:[#allocation5 + $0x478] sm:$0xff]  ;;  %v387_v33 = vld [vmem:[#allocation5 + $0x688] sm:$0xff]  ;;  %v152_v34 = vld [vmem:[#allocation2 + $0x368] sm:$0xff] }
  0x7e   :  { %1997 = vmatprep.subr.bf16.mxu0 %v1996_v41  ;;  %2027 = vmatpush3.bf16.msra.mxu1 %v2026_v44  ;;  %v353_v31 = vld [vmem:[#allocation5 + $0x578] sm:$0xff]  ;;  %v154_v35 = vld [vmem:[#allocation2 + $0x378] sm:$0xff]  ;;  %v168_v36 = vld [vmem:[#allocation2 + $0x3e8] sm:$0xff]  ;;  %v2010_v37 = vpack.c.bf16 %v321_v28, %v320_v27  ;;  %v2044_v40 = vpack.c.bf16 %v387_v33, %v386_v32 }
  0x7f   :  { %750 = vmatmul.mubr.f32.gmra.mrb[26].mxu0 %v107_v50  ;;  %2029 = vmatprep.subr.bf16.mxu1 %v2028_v46  ;;  %v170_v38 = vld [vmem:[#allocation2 + $0x3f8] sm:$0xff]  ;;  %v2042_v39 = vpack.c.bf16 %v353_v31, %v352_v29  ;;  %v167_v41 = vld [vmem:[#allocation2 + $0x3e0] sm:$0xff]  ;;  %v169_v42 = vld [vmem:[#allocation2 + $0x3f0] sm:$0xff] }
  0x80   :  { %860 = vmatmul.mubr.f32.gmra.mrb[26].mxu1 %v109_v53  ;;  %754 = vmatprep.mubr.f32.mxu0 %v123_v54  ;;  %v52_v43 = vld [vmem:[#allocation2 + $0x48] sm:$0xff]  ;;  %v370_v44 = vld [vmem:[#allocation5 + $0x600] sm:$0xff]  ;;  %v371_v45 = vld [vmem:[#allocation5 + $0x608] sm:$0xff] }
  0x81   :  { %1999 = vmatpush3.bf16.msra.mxu0 %v1998_v55  ;;  %864 = vmatprep.mubr.f32.mxu1 %v125_v56  ;;  %v54_v46 = vld [vmem:[#allocation2 + $0x58] sm:$0xff]  ;;  %v388_v47 = vld [vmem:[#allocation5 + $0x690] sm:$0xff]  ;;  %v389_v48 = vld [vmem:[#allocation5 + $0x698] sm:$0xff]  ;;  %v2046_v53 = vpack.c.bf16 %v371_v45, %v370_v44 }
  0x82   :  { %2001 = vmatprep.subr.bf16.mxu0 %v2000_v57  ;;  %2031 = vmatpush3.bf16.msra.mxu1 %v2030_v58  ;;  %v402_v50 = vld [vmem:[#allocation5 + $0x700] sm:$0xff]  ;;  %v403_v51 = vld [vmem:[#allocation5 + $0x708] sm:$0xff]  ;;  %v53_v54 = vld [vmem:[#allocation2 + $0x50] sm:$0xff]  ;;  %v2048_v59 = vpack.c.bf16 %v389_v48, %v388_v47 }
  0x83   :  { %755 = vmatmul.mubr.f32.gmra.mrb[28].mxu0 %v122_v2  ;;  %2033 = vmatprep.subr.bf16.mxu1 %v2032_v62  ;;  %v51_v52 = vld [vmem:[#allocation2 + $0x40] sm:$0xff]  ;;  %v372_v55 = vld [vmem:[#allocation5 + $0x610] sm:$0xff]  ;;  %v373_v56 = vld [vmem:[#allocation5 + $0x618] sm:$0xff]  ;;  %v2077_v60 = vpack.c.bf16 %v403_v51, %v402_v50 }
  0x84   :  { %865 = vmatmul.mubr.f32.gmra.mrb[28].mxu1 %v124_v5  ;;  %759 = vmatprep.mubr.f32.mxu0 %v138_v6  ;;  %v67_v57 = vld [vmem:[#allocation2 + $0xc0] sm:$0xff]  ;;  %v69_v58 = vld [vmem:[#allocation2 + $0xd0] sm:$0xff]  ;;  %v390_v61 = vld [vmem:[#allocation5 + $0x6a0] sm:$0xff]  ;;  %v2050_v2 = vpack.c.bf16 %v373_v56, %v372_v55 }
  0x85   :  { %2003 = vmatpush3.bf16.msra.mxu0 %v2002_v7  ;;  %869 = vmatprep.mubr.f32.mxu1 %v140_v8  ;;  %v391_v62 = vld [vmem:[#allocation5 + $0x6a8] sm:$0xff]  ;;  %v404_v63 = vld [vmem:[#allocation5 + $0x710] sm:$0xff]  ;;  %v405_v0 = vld [vmem:[#allocation5 + $0x718] sm:$0xff] }
  0x86   :  { %2005 = vmatprep.subr.bf16.mxu0 %v2004_v9  ;;  %2035 = vmatpush3.bf16.msra.mxu1 %v2034_v10  ;;  %v66_v1 = vld [vmem:[#allocation2 + $0xb8] sm:$0xff]  ;;  %v68_v3 = vld [vmem:[#allocation2 + $0xc8] sm:$0xff]  ;;  %v375_v5 = vld [vmem:[#allocation5 + $0x628] sm:$0xff]  ;;  %v2052_v8 = vpack.c.bf16 %v391_v62, %v390_v61  ;;  %v2080_v9 = vpack.c.bf16 %v405_v0, %v404_v63  ;;  %v2180_v62 = vmov 0.0  }
  0x87   :  { %760 = vmatmul.mubr.f32.gmra.mrb[30].mxu0 %v137_v18  ;;  %2037 = vmatprep.subr.bf16.mxu1 %v2036_v14  ;;  %v374_v4 = vld [vmem:[#allocation5 + $0x620] sm:$0xff]  ;;  %v84_v7 = vld [vmem:[#allocation2 + $0x148] sm:$0xff]  ;;  %v393_v11 = vld [vmem:[#allocation5 + $0x6b8] sm:$0xff] }
  0x88   :  { %870 = vmatmul.mubr.f32.gmra.mrb[30].mxu1 %v139_v21  ;;  %764 = vmatprep.mubr.f32.mxu0 %v153_v22  ;;  %v82_v6 = vld [vmem:[#allocation2 + $0x138] sm:$0xff]  ;;  %v392_v10 = vld [vmem:[#allocation5 + $0x6b0] sm:$0xff]  ;;  %v407_v13 = vld [vmem:[#allocation5 + $0x728] sm:$0xff]  ;;  %v2054_v15 = vpack.c.bf16 %v375_v5, %v374_v4 }
  0x89   :  { %2007 = vmatpush3.bf16.msra.mxu0 %v2006_v23  ;;  %874 = vmatprep.mubr.f32.mxu1 %v155_v24  ;;  %v406_v12 = vld [vmem:[#allocation5 + $0x720] sm:$0xff]  ;;  %v81_v14 = vld [vmem:[#allocation2 + $0x130] sm:$0xff]  ;;  %v83_v16 = vld [vmem:[#allocation2 + $0x140] sm:$0xff]  ;;  %v2056_v19 = vpack.c.bf16 %v393_v11, %v392_v10 }
  0x8a   :  { %2039 = vmatpush3.bf16.msra.mxu1 %v2038_v25  ;;  %2009 = vmatprep.subr.bf16.mxu0 %v2008_v26  ;;  %v97_v17 = vld [vmem:[#allocation2 + $0x1b0] sm:$0xff]  ;;  %v99_v18 = vld [vmem:[#allocation2 + $0x1c0] sm:$0xff]  ;;  %v376_v20 = vld [vmem:[#allocation5 + $0x630] sm:$0xff]  ;;  %v2083_v23 = vpack.c.bf16 %v407_v13, %v406_v12 }
  0x8b   :  { %765 = vmatmul.mubr.f32.gmra.mrb[32].mxu0 %v152_v34  ;;  %2041 = vmatprep.subr.bf16.mxu1 %v2040_v30  ;;  %v377_v21 = vld [vmem:[#allocation5 + $0x638] sm:$0xff]  ;;  %v394_v22 = vld [vmem:[#allocation5 + $0x6c0] sm:$0xff]  ;;  %v395_v24 = vld [vmem:[#allocation5 + $0x6c8] sm:$0xff] }
  0x8c   :  { %875 = vmatmul.mubr.f32.gmra.mrb[32].mxu1 %v154_v35  ;;  %769 = vmatprep.mubr.f32.mxu0 %v168_v36  ;;  %v408_v25 = vld [vmem:[#allocation5 + $0x730] sm:$0xff]  ;;  %v409_v26 = vld [vmem:[#allocation5 + $0x738] sm:$0xff]  ;;  %v98_v28 = vld [vmem:[#allocation2 + $0x1b8] sm:$0xff]  ;;  %v2058_v30 = vpack.c.bf16 %v377_v21, %v376_v20  ;;  %v2060_v32 = vpack.c.bf16 %v395_v24, %v394_v22 }
  0x8d   :  { %879 = vmatprep.mubr.f32.mxu1 %v170_v38  ;;  %2011 = vmatpush3.bf16.msra.mxu0 %v2010_v37  ;;  %v96_v27 = vld [vmem:[#allocation2 + $0x1a8] sm:$0xff]  ;;  %v114_v31 = vld [vmem:[#allocation2 + $0x238] sm:$0xff]  ;;  %v379_v34 = vld [vmem:[#allocation5 + $0x648] sm:$0xff]  ;;  %v2086_v36 = vpack.c.bf16 %v409_v26, %v408_v25 }
  0x8e   :  { %2043 = vmatpush3.bf16.msra.mxu1 %v2042_v39  ;;  %2045 = vmatprep.subr.bf16.mxu0 %v2044_v40  ;;  %v112_v29 = vld [vmem:[#allocation2 + $0x228] sm:$0xff]  ;;  %v378_v33 = vld [vmem:[#allocation5 + $0x640] sm:$0xff]  ;;  %v397_v37 = vld [vmem:[#allocation5 + $0x6d8] sm:$0xff] }
  0x8f   :  { %770 = vmatmul.mubr.f32.gmra.mrb[34].mxu0 %v167_v41  ;;  %2076 = vmatprep.subr.bf16.mxu1 %v2179_v49  ;;  %v396_v35 = vld [vmem:[#allocation5 + $0x6d0] sm:$0xff]  ;;  %v410_v38 = vld [vmem:[#allocation5 + $0x740] sm:$0xff]  ;;  %v411_v39 = vld [vmem:[#allocation5 + $0x748] sm:$0xff] }
  0x90   :  { %880 = vmatmul.mubr.f32.gmra.mrb[34].mxu1 %v169_v42  ;;  %949 = vmatprep.mubr.f32.mxu0 %v52_v43  ;;  %v111_v40 = vld [vmem:[#allocation2 + $0x220] sm:$0xff]  ;;  %v113_v41 = vld [vmem:[#allocation2 + $0x230] sm:$0xff]  ;;  %v2062_v43 = vpack.c.bf16 %v379_v34, %v378_v33  ;;  %v2064_v45 = vpack.c.bf16 %v397_v37, %v396_v35  ;;  %v2089_v48 = vpack.c.bf16 %v411_v39, %v410_v38  ;;  %v398_v50 = vld [vmem:[#allocation5 + $0x6e0] sm:$0xff] }
  0x91   :  { %1059 = vmatprep.mubr.f32.mxu1 %v54_v46  ;;  %v127_v42 = vld [vmem:[#allocation2 + $0x2a0] sm:$0xff]  ;;  %v129_v44 = vld [vmem:[#allocation2 + $0x2b0] sm:$0xff]  ;;  %v380_v46 = vld [vmem:[#allocation5 + $0x650] sm:$0xff] }
  0x92   :  { %v381_v47 = vld [vmem:[#allocation5 + $0x658] sm:$0xff]  ;;  %v399_v51 = vld [vmem:[#allocation5 + $0x6e8] sm:$0xff]  ;;  %v144_v56 = vld [vmem:[#allocation2 + $0x328] sm:$0xff] }
  0x93   :  { %950 = vmatmul.mubr.f32.vlgmr.msra.gmra.mrb[36].mxu0 %v51_v52  ;;  %v126_v52 = vld [vmem:[#allocation2 + $0x298] sm:$0xff]  ;;  %v2066_v55 = vpack.c.bf16 %v381_v47, %v380_v46  ;;  %v401_v61 = vld [vmem:[#allocation5 + $0x6f8] sm:$0xff]  ;;  %v143_v0 = vld [vmem:[#allocation2 + $0x320] sm:$0xff] }
  0x94   :  { %2047 = vmatpush3.bf16.msra.mxu0 %v2046_v53  ;;  %1060 = vmatmul.mubr.f32.vlgmr.msra.gmra.mrb[36].mxu1 %v53_v54  ;;  %v128_v53 = vld [vmem:[#allocation2 + $0x2a8] sm:$0xff]  ;;  %v142_v54 = vld [vmem:[#allocation2 + $0x318] sm:$0xff]  ;;  %v141_v63 = vld [vmem:[#allocation2 + $0x310] sm:$0xff] }
  0x95   :  { %954 = vmatprep.mubr.f32.mxu0 %v67_v57  ;;  %1064 = vmatprep.mubr.f32.mxu1 %v69_v58  ;;  %v2068_v57 = vpack.c.bf16 %v399_v51, %v398_v50  ;;  %v382_v58 = vld [vmem:[#allocation5 + $0x660] sm:$0xff]  ;;  %v384_v5 = vld [vmem:[#allocation5 + $0x670] sm:$0xff]  ;;  %v171_v12 = vld [vmem:[#allocation2 + $0x400] sm:$0xff] }
  0x96   :  { %2049 = vmatprep.subr.bf16.mxu0 %v2048_v59  ;;  %2078 = vmatpush3.bf16.msra.mxu1 %v2077_v60  ;;  %v383_v59 = vld [vmem:[#allocation5 + $0x668] sm:$0xff]  ;;  %v400_v60 = vld [vmem:[#allocation5 + $0x6f0] sm:$0xff]  ;;  %v174_v11 = vld [vmem:[#allocation2 + $0x418] sm:$0xff] }
  0x97   :  { %955 = vmatmul.mubr.f32.gmra.mrb[38].mxu0 %v66_v1  ;;  %2079 = vmatprep.subr.bf16.mxu1 %v2179_v49  ;;  %v157_v1 = vld [vmem:[#allocation2 + $0x390] sm:$0xff]  ;;  %v2072_v4 = vpack.c.bf16 %v401_v61, %v400_v60  ;;  %v72_v20 = vld [vmem:[#allocation2 + $0xe8] sm:$0xff]  ;;  %v102_v26 = vld [vmem:[#allocation2 + $0x1d8] sm:$0xff] }
  0x98   :  { %1065 = vmatmul.mubr.f32.gmra.mrb[38].mxu1 %v68_v3  ;;  %2051 = vmatpush3.bf16.msra.mxu0 %v2050_v2  ;;  %v2070_v2 = vpack.c.bf16 %v383_v59, %v382_v58  ;;  %v159_v3 = vld [vmem:[#allocation2 + $0x3a0] sm:$0xff]  ;;  %v173_v13 = vld [vmem:[#allocation2 + $0x410] sm:$0xff]  ;;  %v100_v24 = vld [vmem:[#allocation2 + $0x1c8] sm:$0xff] }
  0x99   :  { %959 = vmatprep.mubr.f32.mxu0 %v82_v6  ;;  %1069 = vmatprep.mubr.f32.mxu1 %v84_v7  ;;  %v385_v6 = vld [vmem:[#allocation5 + $0x678] sm:$0xff]  ;;  %v156_v7 = vld [vmem:[#allocation2 + $0x388] sm:$0xff]  ;;  %v147_v35 = vld [vmem:[#allocation2 + $0x340] sm:$0xff] }
  0x9a   :  { %2053 = vmatprep.subr.bf16.mxu0 %v2052_v8  ;;  %2081 = vmatpush3.bf16.msra.mxu1 %v2080_v9  ;;  %v158_v8 = vld [vmem:[#allocation2 + $0x398] sm:$0xff]  ;;  %v172_v9 = vld [vmem:[#allocation2 + $0x408] sm:$0xff]  ;;  %v2074_v10 = vpack.c.bf16 %v385_v6, %v384_v5  ;;  %v85_v21 = vld [vmem:[#allocation2 + $0x150] sm:$0xff] }
  0x9b   :  { %960 = vmatmul.mubr.f32.gmra.mrb[40].mxu0 %v81_v14  ;;  %2082 = vmatprep.subr.bf16.mxu1 %v2179_v49  ;;  %v56_v14 = vld [vmem:[#allocation2 + $0x68] sm:$0xff]  ;;  %v101_v22 = vld [vmem:[#allocation2 + $0x1d0] sm:$0xff]  ;;  %v162_v38 = vld [vmem:[#allocation2 + $0x3b8] sm:$0xff] }
  0x9c   :  { %1070 = vmatmul.mubr.f32.gmra.mrb[40].mxu1 %v83_v16  ;;  %2055 = vmatpush3.bf16.msra.mxu0 %v2054_v15  ;;  %v55_v15 = vld [vmem:[#allocation2 + $0x60] sm:$0xff]  ;;  %v116_v25 = vld [vmem:[#allocation2 + $0x248] sm:$0xff]  ;;  %v145_v33 = vld [vmem:[#allocation2 + $0x330] sm:$0xff] }
  0x9d   :  { %964 = vmatprep.mubr.f32.mxu0 %v97_v17  ;;  %1074 = vmatprep.mubr.f32.mxu1 %v99_v18  ;;  %v71_v16 = vld [vmem:[#allocation2 + $0xe0] sm:$0xff]  ;;  %v57_v17 = vld [vmem:[#allocation2 + $0x70] sm:$0xff]  ;;  %v70_v18 = vld [vmem:[#allocation2 + $0xd8] sm:$0xff] }
  0x9e   :  { %2057 = vmatprep.subr.bf16.mxu0 %v2056_v19  ;;  %2084 = vmatpush3.bf16.msra.mxu1 %v2083_v23  ;;  %v86_v19 = vld [vmem:[#allocation2 + $0x158] sm:$0xff]  ;;  %v87_v23 = vld [vmem:[#allocation2 + $0x160] sm:$0xff]  ;;  %v161_v34 = vld [vmem:[#allocation2 + $0x3b0] sm:$0xff] }
  0x9f   :  { %965 = vmatmul.mubr.f32.gmra.mrb[42].mxu0 %v96_v27  ;;  %2085 = vmatprep.subr.bf16.mxu1 %v2179_v49  ;;  %v115_v27 = vld [vmem:[#allocation2 + $0x240] sm:$0xff]  ;;  %v176_v37 = vld [vmem:[#allocation2 + $0x428] sm:$0xff] }
  0xa0   :  { %1075 = vmatmul.mubr.f32.gmra.mrb[42].mxu1 %v98_v28  ;;  %969 = vmatprep.mubr.f32.mxu0 %v112_v29  ;;  %v131_v28 = vld [vmem:[#allocation2 + $0x2c0] sm:$0xff]  ;;  %v117_v29 = vld [vmem:[#allocation2 + $0x250] sm:$0xff] }
  0xa1   :  { %2059 = vmatpush3.bf16.msra.mxu0 %v2058_v30  ;;  %1079 = vmatprep.mubr.f32.mxu1 %v114_v31  ;;  %v130_v30 = vld [vmem:[#allocation2 + $0x2b8] sm:$0xff]  ;;  %v175_v39 = vld [vmem:[#allocation2 + $0x420] sm:$0xff] }
  0xa2   :  { %2061 = vmatprep.subr.bf16.mxu0 %v2060_v32  ;;  %2087 = vmatpush3.bf16.msra.mxu1 %v2086_v36  ;;  %v146_v31 = vld [vmem:[#allocation2 + $0x338] sm:$0xff]  ;;  %v132_v32 = vld [vmem:[#allocation2 + $0x2c8] sm:$0xff] }
  0xa3   :  { %970 = vmatmul.mubr.f32.gmra.mrb[44].mxu0 %v111_v40  ;;  %2088 = vmatprep.subr.bf16.mxu1 %v2179_v49  ;;  %v412_v49 = vld [vmem:[#allocation5 + $0x750] sm:$0x7]  ;;  %v177_v40 = vld [vmem:[#allocation2 + $0x430] sm:$0xff] }
  0xa4   :  { %1080 = vmatmul.mubr.f32.gmra.mrb[44].mxu1 %v113_v41  ;;  %974 = vmatprep.mubr.f32.mxu0 %v127_v42  ;;  %v160_v36 = vld [vmem:[#allocation2 + $0x3a8] sm:$0xff] }
  0xa5   :  { %2063 = vmatpush3.bf16.msra.mxu0 %v2062_v43  ;;  %1084 = vmatprep.mubr.f32.mxu1 %v129_v44 }
  0xa6   :  { %2065 = vmatprep.subr.bf16.mxu0 %v2064_v45  ;;  %2090 = vmatpush3.bf16.msra.mxu1 %v2089_v48 }
  0xa7   :  { %975 = vmatmul.mubr.f32.gmra.mrb[46].mxu0 %v126_v52  ;;  %1823 = vmatprep.subr.mxu1 %v2180_v62 }
  0xa8   :  { %1085 = vmatmul.mubr.f32.gmra.mrb[46].mxu1 %v128_v53  ;;  %979 = vmatprep.mubr.f32.mxu0 %v142_v54 }
  0xa9   :  { %2067 = vmatpush3.bf16.msra.mxu0 %v2066_v55  ;;  %1089 = vmatprep.mubr.f32.mxu1 %v144_v56 }
  0xaa   :  { %2069 = vmatprep.subr.bf16.mxu0 %v2068_v57  ;;  %1824 = vmatpush3.msk.msra.mxu1 %vm441_vm0, %v412_v49 }
  0xab   :  { %980 = vmatmul.mubr.f32.gmra.mrb[48].mxu0 %v141_v63 }
  0xac   :  { %1090 = vmatmul.mubr.f32.gmra.mrb[48].mxu1 %v143_v0  ;;  %984 = vmatprep.mubr.f32.mxu0 %v157_v1 }
  0xad   :  { %2071 = vmatpush3.bf16.msra.mxu0 %v2070_v2  ;;  %1094 = vmatprep.mubr.f32.mxu1 %v159_v3 }
  0xae   :  { %2073 = vmatprep.subr.bf16.mxu0 %v2072_v4 }
  0xaf   :  { %985 = vmatmul.mubr.f32.gmra.mrb[50].mxu0 %v156_v7 }
  0xb0   :  { %1095 = vmatmul.mubr.f32.gmra.mrb[50].mxu1 %v158_v8  ;;  %989 = vmatprep.mubr.f32.mxu0 %v172_v9 }
  0xb1   :  { %1099 = vmatprep.mubr.f32.mxu1 %v174_v11  ;;  %2075 = vmatpush3.bf16.msra.mxu0 %v2074_v10 }
  0xb3   :  { %990 = vmatmul.mubr.f32.gmra.mrb[52].mxu0 %v171_v12 }
  0xb4   :  { %1100 = vmatmul.mubr.f32.gmra.mrb[52].mxu1 %v173_v13  ;;  %1169 = vmatprep.mubr.f32.mxu0 %v56_v14 }
  0xb5   :  { %1825 = vmatprep.mubr.msk.f32.mxu1 %vm2181_vm1, %v2180_v62 }
  0xb7   :  { %1170 = vmatmul.mubr.f32.vlgmr.msra.gmra.mrb[54].mxu0 %v55_v15 }
  0xb8   :  { %1174 = vmatprep.mubr.f32.mxu0 %v71_v16  ;;  %1826 = vmatmul.mubr.msk.f32.vlgmr.msra.gmra.mrb[54].mxu1 %vm413_vm2, %v57_v17 }
  0xb9   :  { %1828 = vmatprep.mubr.msk.f32.mxu1 %vm2181_vm1, %v2180_v62 }
  0xbb   :  { %1175 = vmatmul.mubr.f32.gmra.mrb[56].mxu0 %v70_v18 }
  0xbc   :  { %1179 = vmatprep.mubr.f32.mxu0 %v86_v19  ;;  %1829 = vmatmul.mubr.msk.f32.gmra.mrb[56].mxu1 %vm413_vm2, %v72_v20 }
  0xbd   :  { %1831 = vmatprep.mubr.msk.f32.mxu1 %vm2181_vm1, %v2180_v62 }
  0xbf   :  { %1180 = vmatmul.mubr.f32.gmra.mrb[58].mxu0 %v85_v21 }
  0xc0   :  { %1184 = vmatprep.mubr.f32.mxu0 %v101_v22  ;;  %1832 = vmatmul.mubr.msk.f32.gmra.mrb[58].mxu1 %vm413_vm2, %v87_v23 }
  0xc1   :  { %1834 = vmatprep.mubr.msk.f32.mxu1 %vm2181_vm1, %v2180_v62 }
  0xc3   :  { %1185 = vmatmul.mubr.f32.gmra.mrb[60].mxu0 %v100_v24 }
  0xc4   :  { %1189 = vmatprep.mubr.f32.mxu0 %v116_v25  ;;  %1835 = vmatmul.mubr.msk.f32.gmra.mrb[60].mxu1 %vm413_vm2, %v102_v26 }
  0xc5   :  { %1837 = vmatprep.mubr.msk.f32.mxu1 %vm2181_vm1, %v2180_v62 }
  0xc7   :  { %1190 = vmatmul.mubr.f32.gmra.mrb[62].mxu0 %v115_v27 }
  0xc8   :  { %1194 = vmatprep.mubr.f32.mxu0 %v131_v28  ;;  %1838 = vmatmul.mubr.msk.f32.gmra.mrb[62].mxu1 %vm413_vm2, %v117_v29 }
  0xc9   :  { %1840 = vmatprep.mubr.msk.f32.mxu1 %vm2181_vm1, %v2180_v62 }
  0xcb   :  { %1195 = vmatmul.mubr.f32.gmra.mrb[64].mxu0 %v130_v30 }
  0xcc   :  { %1199 = vmatprep.mubr.f32.mxu0 %v146_v31  ;;  %1841 = vmatmul.mubr.msk.f32.gmra.mrb[64].mxu1 %vm413_vm2, %v132_v32 }
  0xcd   :  { %1843 = vmatprep.mubr.msk.f32.mxu1 %vm2181_vm1, %v2180_v62 }
  0xcf   :  { %1200 = vmatmul.mubr.f32.gmra.mrb[66].mxu0 %v145_v33 }
  0xd0   :  { %1204 = vmatprep.mubr.f32.mxu0 %v161_v34  ;;  %1844 = vmatmul.mubr.msk.f32.gmra.mrb[66].mxu1 %vm413_vm2, %v147_v35 }
  0xd1   :  { %1846 = vmatprep.mubr.msk.f32.mxu1 %vm2181_vm1, %v2180_v62 }
  0xd3   :  { %1205 = vmatmul.mubr.f32.gmra.mrb[68].mxu0 %v160_v36 }
  0xd4   :  { %1209 = vmatprep.mubr.f32.mxu0 %v176_v37  ;;  %1847 = vmatmul.mubr.msk.f32.gmra.mrb[68].mxu1 %vm413_vm2, %v162_v38 }
  0xd5   :  { %1849 = vmatprep.mubr.msk.f32.mxu1 %vm2181_vm1, %v2180_v62 }
  0xd7   :  { %1210 = vmatmul.mubr.f32.gmra.mrb[70].mxu0 %v175_v39 }
  0xd8   :  { %1850 = vmatmul.mubr.msk.f32.gmra.mrb[70].mxu1 %vm413_vm2, %v177_v40 }
 0x11e   :  { %v1402_v41 = vpop.f32.mrb[0].mxu0 }
 0x11f   :  { %v1461_v42 = vpop.f32.mrb[0].mxu1  ;;  %v1403_v43 = vpop.f32.mrb[1].mxu0 }
 0x120   :  { %v1404_v44 = vadd.f32 %v1403_v43, %v1402_v41  ;;  %v1462_v45 = vpop.f32.mrb[1].mxu1 }
 0x121   :  { %v1463_v46 = vadd.f32 %v1462_v45, %v1461_v42 }
 0x122   :  { %v1405_v47 = vpop.f32.mrb[2].mxu0 }
 0x123   :  { %v622_v48 = vadd.f32 %v1463_v46, %v1404_v44  ;;  %v1464_v50 = vpop.f32.mrb[2].mxu1  ;;  %v1406_v51 = vpop.f32.mrb[3].mxu0 }
 0x124   :  { %v1407_v52 = vadd.f32 %v1406_v51, %v1405_v47  ;;  %v1465_v53 = vpop.f32.mrb[3].mxu1 }
 0x125   :  { %v1466_v54 = vadd.f32 %v1465_v53, %v1464_v50 }
 0x126   :  { %v1408_v55 = vpop.f32.mrb[4].mxu0 }
 0x127   :  { %v2260_v56 = vadd.f32 %v1466_v54, %v1407_v52  ;;  %v1467_v57 = vpop.f32.mrb[4].mxu1  ;;  %v1409_v58 = vpop.f32.mrb[5].mxu0 }
 0x128   :  { %v1410_v59 = vadd.f32 %v1409_v58, %v1408_v55  ;;  %v1468_v60 = vpop.f32.mrb[5].mxu1 }
 0x129   :  { %v1469_v61 = vadd.f32 %v1468_v60, %v1467_v57 }
 0x12a   :  { %v1411_v62 = vpop.f32.mrb[6].mxu0 }
 0x12b   :  { %v2262_v49 = vadd.f32 %v1469_v61, %v1410_v59  ;;  %v1470_v63 = vpop.f32.mrb[6].mxu1  ;;  %v1412_v0 = vpop.f32.mrb[7].mxu0 }
 0x12c   :  { %v1413_v1 = vadd.f32 %v1412_v0, %v1411_v62  ;;  %v1471_v2 = vpop.f32.mrb[7].mxu1 }
 0x12d   :  { %v1472_v3 = vadd.f32 %v1471_v2, %v1470_v63 }
 0x12e   :  { %v1414_v4 = vpop.f32.mrb[8].mxu0 }
 0x12f   :  { %v2264_v5 = vadd.f32 %v1472_v3, %v1413_v1  ;;  %v1473_v6 = vpop.f32.mrb[8].mxu1  ;;  %v1415_v7 = vpop.f32.mrb[9].mxu0 }
 0x130   :  { %v1416_v8 = vadd.f32 %v1415_v7, %v1414_v4  ;;  %v1474_v9 = vpop.f32.mrb[9].mxu1 }
 0x131   :  { %v1475_v10 = vadd.f32 %v1474_v9, %v1473_v6 }
 0x132   :  { %v1417_v11 = vpop.f32.mrb[10].mxu0 }
 0x133   :  { %v2266_v12 = vadd.f32 %v1475_v10, %v1416_v8  ;;  %v1476_v13 = vpop.f32.mrb[10].mxu1  ;;  %v1418_v14 = vpop.f32.mrb[11].mxu0 }
 0x134   :  { %v1419_v15 = vadd.f32 %v1418_v14, %v1417_v11  ;;  %v1477_v16 = vpop.f32.mrb[11].mxu1 }
 0x135   :  { %v1478_v17 = vadd.f32 %v1477_v16, %v1476_v13 }
 0x136   :  { %v1420_v18 = vpop.f32.mrb[12].mxu0 }
 0x137   :  { %v2268_v19 = vadd.f32 %v1478_v17, %v1419_v15  ;;  %v1479_v20 = vpop.f32.mrb[12].mxu1  ;;  %v1421_v21 = vpop.f32.mrb[13].mxu0 }
 0x138   :  { %v1422_v22 = vadd.f32 %v1421_v21, %v1420_v18  ;;  %v1480_v23 = vpop.f32.mrb[13].mxu1 }
 0x139   :  { %v1481_v24 = vadd.f32 %v1480_v23, %v1479_v20 }
 0x13a   :  { %v1423_v25 = vpop.f32.mrb[14].mxu0 }
 0x13b   :  { %v2270_v26 = vadd.f32 %v1481_v24, %v1422_v22  ;;  %v1482_v27 = vpop.f32.mrb[14].mxu1  ;;  %v1424_v28 = vpop.f32.mrb[15].mxu0 }
 0x13c   :  { %v1425_v29 = vadd.f32 %v1424_v28, %v1423_v25  ;;  %v1483_v30 = vpop.f32.mrb[15].mxu1 }
 0x13d   :  { %v1484_v31 = vadd.f32 %v1483_v30, %v1482_v27 }
 0x13e   :  { %v1426_v32 = vpop.f32.mrb[16].mxu0 }
 0x13f   :  { %v2272_v33 = vadd.f32 %v1484_v31, %v1425_v29  ;;  %v1485_v34 = vpop.f32.mrb[16].mxu1  ;;  %v1427_v35 = vpop.f32.mrb[17].mxu0 }
 0x140   :  { %v1428_v36 = vadd.f32 %v1427_v35, %v1426_v32  ;;  %v1486_v37 = vpop.f32.mrb[17].mxu1 }
 0x141   :  { %v1487_v38 = vadd.f32 %v1486_v37, %v1485_v34 }
 0x142   :  { %v1520_v39 = vpop.f32.mrb[18].mxu0 }
 0x143   :  { %v2274_v40 = vadd.f32 %v1487_v38, %v1428_v36  ;;  %v1521_v41 = vpop.f32.mrb[19].mxu0  ;;  %v1579_v42 = vpop.f32.mrb[18].mxu1 }
 0x144   :  { %v1522_v43 = vadd.f32 %v1521_v41, %v1520_v39  ;;  %v1580_v44 = vpop.f32.mrb[19].mxu1 }
 0x145   :  { %v1581_v45 = vadd.f32 %v1580_v44, %v1579_v42 }
 0x146   :  { %v732_v46 = vadd.f32 %v1522_v43, %v622_v48  ;;  %v1523_v47 = vpop.f32.mrb[20].mxu0 }
 0x147   :  { %v1524_v50 = vpop.f32.mrb[21].mxu0  ;;  %v1582_v51 = vpop.f32.mrb[20].mxu1 }
 0x148   :  { %v2276_v52 = vadd.f32 %v1581_v45, %v732_v46  ;;  %v1525_v53 = vadd.f32 %v1524_v50, %v1523_v47  ;;  %v1583_v54 = vpop.f32.mrb[21].mxu1 }
 0x149   :  { %v1584_v55 = vadd.f32 %v1583_v54, %v1582_v51 }
 0x14a   :  { %v737_v57 = vadd.f32 %v1525_v53, %v2260_v56  ;;  %v1526_v58 = vpop.f32.mrb[22].mxu0 }
 0x14b   :  { %v1527_v59 = vpop.f32.mrb[23].mxu0  ;;  %v1585_v60 = vpop.f32.mrb[22].mxu1 }
 0x14c   :  { %v2279_v61 = vadd.f32 %v1584_v55, %v737_v57  ;;  %v1528_v62 = vadd.f32 %v1527_v59, %v1526_v58  ;;  %v1586_v63 = vpop.f32.mrb[23].mxu1 }
 0x14d   :  { %v1587_v0 = vadd.f32 %v1586_v63, %v1585_v60 }
 0x14e   :  { %v742_v48 = vadd.f32 %v1528_v62, %v2262_v49  ;;  %v1529_v1 = vpop.f32.mrb[24].mxu0 }
 0x14f   :  { %v1530_v2 = vpop.f32.mrb[25].mxu0  ;;  %v1588_v3 = vpop.f32.mrb[24].mxu1 }
 0x150   :  { %v2282_v4 = vadd.f32 %v1587_v0, %v742_v48  ;;  %v1531_v6 = vadd.f32 %v1530_v2, %v1529_v1  ;;  %v1589_v7 = vpop.f32.mrb[25].mxu1 }
 0x151   :  { %v1590_v8 = vadd.f32 %v1589_v7, %v1588_v3 }
 0x152   :  { %v747_v56 = vadd.f32 %v1531_v6, %v2264_v5  ;;  %v1532_v9 = vpop.f32.mrb[26].mxu0 }
 0x153   :  { %v1533_v10 = vpop.f32.mrb[27].mxu0  ;;  %v1591_v11 = vpop.f32.mrb[26].mxu1 }
 0x154   :  { %v2285_v13 = vadd.f32 %v1590_v8, %v747_v56  ;;  %v1534_v14 = vadd.f32 %v1533_v10, %v1532_v9  ;;  %v1592_v15 = vpop.f32.mrb[27].mxu1 }
 0x155   :  { %v1593_v16 = vadd.f32 %v1592_v15, %v1591_v11 }
 0x156   :  { %v752_v49 = vadd.f32 %v1534_v14, %v2266_v12  ;;  %v1535_v17 = vpop.f32.mrb[28].mxu0 }
 0x157   :  { %v1536_v18 = vpop.f32.mrb[29].mxu0  ;;  %v1594_v20 = vpop.f32.mrb[28].mxu1 }
 0x158   :  { %v2288_v21 = vadd.f32 %v1593_v16, %v752_v49  ;;  %v1537_v22 = vadd.f32 %v1536_v18, %v1535_v17  ;;  %v1595_v23 = vpop.f32.mrb[29].mxu1 }
 0x159   :  { %v1596_v24 = vadd.f32 %v1595_v23, %v1594_v20 }
 0x15a   :  { %v757_v5 = vadd.f32 %v1537_v22, %v2268_v19  ;;  %v1538_v25 = vpop.f32.mrb[30].mxu0 }
 0x15b   :  { %v1539_v27 = vpop.f32.mrb[31].mxu0  ;;  %v1597_v28 = vpop.f32.mrb[30].mxu1 }
 0x15c   :  { %v2291_v29 = vadd.f32 %v1596_v24, %v757_v5  ;;  %v1540_v30 = vadd.f32 %v1539_v27, %v1538_v25  ;;  %v1598_v31 = vpop.f32.mrb[31].mxu1 }
 0x15d   :  { %v1599_v32 = vadd.f32 %v1598_v31, %v1597_v28 }
 0x15e   :  { %v762_v12 = vadd.f32 %v1540_v30, %v2270_v26  ;;  %v1541_v34 = vpop.f32.mrb[32].mxu0 }
 0x15f   :  { %v1542_v35 = vpop.f32.mrb[33].mxu0  ;;  %v1600_v36 = vpop.f32.mrb[32].mxu1 }
 0x160   :  { %v2294_v37 = vadd.f32 %v1599_v32, %v762_v12  ;;  %v1543_v38 = vadd.f32 %v1542_v35, %v1541_v34  ;;  %v1601_v39 = vpop.f32.mrb[33].mxu1 }
 0x161   :  { %v1602_v41 = vadd.f32 %v1601_v39, %v1600_v36 }
 0x162   :  { %v767_v19 = vadd.f32 %v1543_v38, %v2272_v33  ;;  %v1544_v42 = vpop.f32.mrb[34].mxu0 }
 0x163   :  { %v1545_v43 = vpop.f32.mrb[35].mxu0  ;;  %v1603_v44 = vpop.f32.mrb[34].mxu1 }
 0x164   :  { %v2297_v45 = vadd.f32 %v1602_v41, %v767_v19  ;;  %v1546_v46 = vadd.f32 %v1545_v43, %v1544_v42  ;;  %v1604_v47 = vpop.f32.mrb[35].mxu1 }
 0x165   :  { %v1605_v50 = vadd.f32 %v1604_v47, %v1603_v44 }
 0x166   :  { %v772_v26 = vadd.f32 %v1546_v46, %v2274_v40  ;;  %v1638_v51 = vpop.f32.mrb[36].mxu0 }
 0x167   :  { %v1639_v53 = vpop.f32.mrb[37].mxu0  ;;  %v1697_v54 = vpop.f32.mrb[36].mxu1 }
 0x168   :  { %v2300_v55 = vadd.f32 %v1605_v50, %v772_v26  ;;  %v1640_v57 = vadd.f32 %v1639_v53, %v1638_v51  ;;  %v1698_v58 = vpop.f32.mrb[37].mxu1 }
 0x169   :  { %v1699_v59 = vadd.f32 %v1698_v58, %v1697_v54 }
 0x16a   :  { %v952_v33 = vadd.f32 %v1640_v57, %v2276_v52  ;;  %v1641_v60 = vpop.f32.mrb[38].mxu0 }
 0x16b   :  { %v1642_v62 = vpop.f32.mrb[39].mxu0  ;;  %v1700_v63 = vpop.f32.mrb[38].mxu1 }
 0x16c   :  { %v2303_v0 = vadd.f32 %v1699_v59, %v952_v33  ;;  %v1643_v48 = vadd.f32 %v1642_v62, %v1641_v60  ;;  %v1701_v1 = vpop.f32.mrb[39].mxu1 }
 0x16d   :  { %v1702_v2 = vadd.f32 %v1701_v1, %v1700_v63 }
 0x16e   :  { %v957_v40 = vadd.f32 %v1643_v48, %v2279_v61  ;;  %v1644_v3 = vpop.f32.mrb[40].mxu0 }
 0x16f   :  { %v1645_v6 = vpop.f32.mrb[41].mxu0  ;;  %v1703_v7 = vpop.f32.mrb[40].mxu1 }
 0x170   :  { %v2306_v8 = vadd.f32 %v1702_v2, %v957_v40  ;;  %v1646_v56 = vadd.f32 %v1645_v6, %v1644_v3  ;;  %v1704_v9 = vpop.f32.mrb[41].mxu1 }
 0x171   :  { %v1705_v10 = vadd.f32 %v1704_v9, %v1703_v7 }
 0x172   :  { %v962_v52 = vadd.f32 %v1646_v56, %v2282_v4  ;;  %v1647_v11 = vpop.f32.mrb[42].mxu0 }
 0x173   :  { %v1648_v14 = vpop.f32.mrb[43].mxu0  ;;  %v1706_v15 = vpop.f32.mrb[42].mxu1 }
 0x174   :  { %v2309_v16 = vadd.f32 %v1705_v10, %v962_v52  ;;  %v1649_v49 = vadd.f32 %v1648_v14, %v1647_v11  ;;  %v1707_v17 = vpop.f32.mrb[43].mxu1 }
 0x175   :  { %v1708_v18 = vadd.f32 %v1707_v17, %v1706_v15 }
 0x176   :  { %v967_v61 = vadd.f32 %v1649_v49, %v2285_v13  ;;  %v1650_v20 = vpop.f32.mrb[44].mxu0 }
 0x177   :  { %v1651_v22 = vpop.f32.mrb[45].mxu0  ;;  %v1709_v23 = vpop.f32.mrb[44].mxu1 }
 0x178   :  { %v2312_v24 = vadd.f32 %v1708_v18, %v967_v61  ;;  %v1652_v5 = vadd.f32 %v1651_v22, %v1650_v20  ;;  %v1710_v25 = vpop.f32.mrb[45].mxu1 }
 0x179   :  { %v1711_v27 = vadd.f32 %v1710_v25, %v1709_v23 }
 0x17a   :  { %v972_v4 = vadd.f32 %v1652_v5, %v2288_v21  ;;  %v1653_v28 = vpop.f32.mrb[46].mxu0 }
 0x17b   :  { %v1654_v30 = vpop.f32.mrb[47].mxu0  ;;  %v1712_v31 = vpop.f32.mrb[46].mxu1 }
 0x17c   :  { %v2315_v32 = vadd.f32 %v1711_v27, %v972_v4  ;;  %v1655_v12 = vadd.f32 %v1654_v30, %v1653_v28  ;;  %v1713_v34 = vpop.f32.mrb[47].mxu1 }
 0x17d   :  { %v1714_v35 = vadd.f32 %v1713_v34, %v1712_v31 }
 0x17e   :  { %v977_v13 = vadd.f32 %v1655_v12, %v2291_v29  ;;  %v1656_v36 = vpop.f32.mrb[48].mxu0 }
 0x17f   :  { %v1657_v38 = vpop.f32.mrb[49].mxu0  ;;  %v1715_v39 = vpop.f32.mrb[48].mxu1 }
 0x180   :  { %v2318_v41 = vadd.f32 %v1714_v35, %v977_v13  ;;  %v1658_v19 = vadd.f32 %v1657_v38, %v1656_v36  ;;  %v1716_v42 = vpop.f32.mrb[49].mxu1 }
 0x181   :  { %v1717_v43 = vadd.f32 %v1716_v42, %v1715_v39 }
 0x182   :  { %v982_v21 = vadd.f32 %v1658_v19, %v2294_v37  ;;  %v1659_v44 = vpop.f32.mrb[50].mxu0 }
 0x183   :  { %v1660_v46 = vpop.f32.mrb[51].mxu0  ;;  %v1718_v47 = vpop.f32.mrb[50].mxu1 }
 0x184   :  { %v2321_v50 = vadd.f32 %v1717_v43, %v982_v21  ;;  %v1661_v26 = vadd.f32 %v1660_v46, %v1659_v44  ;;  %v1719_v51 = vpop.f32.mrb[51].mxu1 }
 0x185   :  { %v1720_v53 = vadd.f32 %v1719_v51, %v1718_v47 }
 0x186   :  { %v987_v29 = vadd.f32 %v1661_v26, %v2297_v45  ;;  %v1662_v54 = vpop.f32.mrb[52].mxu0 }
 0x187   :  { %v1663_v57 = vpop.f32.mrb[53].mxu0  ;;  %v1721_v58 = vpop.f32.mrb[52].mxu1 }
 0x188   :  { %v2324_v59 = vadd.f32 %v1720_v53, %v987_v29  ;;  %v1664_v33 = vadd.f32 %v1663_v57, %v1662_v54  ;;  %v1722_v60 = vpop.f32.mrb[53].mxu1 }
 0x189   :  { %v1723_v62 = vadd.f32 %v1722_v60, %v1721_v58 }
 0x18a   :  { %v992_v37 = vadd.f32 %v1664_v33, %v2300_v55  ;;  %v1756_v63 = vpop.f32.mrb[54].mxu0 }
 0x18b   :  { %v1757_v48 = vpop.f32.mrb[55].mxu0  ;;  %v1281_v1 = vpop.f32.mrb[54].mxu1 }
 0x18c   :  { %v2327_v2 = vadd.f32 %v1723_v62, %v992_v37  ;;  %v1758_v40 = vadd.f32 %v1757_v48, %v1756_v63  ;;  %v1827_v3 = vpop.f32.mrb[55].mxu1 }
 0x18e   :  { %v1759_v6 = vpop.f32.mrb[56].mxu0  ;;  %v1172_v45 = vadd.f32 %v1758_v40, %v2303_v0 }
 0x18f   :  { %v1760_v7 = vpop.f32.mrb[57].mxu0  ;;  %v1286_v56 = vpop.f32.mrb[56].mxu1 }
 0x190   :  { %v1761_v9 = vadd.f32 %v1760_v7, %v1759_v6  ;;  %v1282_v10 = vadd.f32 %v1281_v1, %v1172_v45  ;;  %v1830_v52 = vpop.f32.mrb[57].mxu1 }
 0x192   :  { %v1762_v11 = vpop.f32.mrb[58].mxu0  ;;  %v1177_v14 = vadd.f32 %v1761_v9, %v2306_v8 }
 0x193   :  { %v1763_v15 = vpop.f32.mrb[59].mxu0  ;;  %v1291_v55 = vpop.f32.mrb[58].mxu1 }
 0x194   :  { %v1764_v49 = vadd.f32 %v1763_v15, %v1762_v11  ;;  %v1287_v17 = vadd.f32 %v1286_v56, %v1177_v14  ;;  %v1833_v18 = vpop.f32.mrb[59].mxu1  ;;  %v1369_v56 = vld [vmem:[%s2355_s2] ss:$0 sm:$0xff] }
 0x196   :  { %v1765_v61 = vpop.f32.mrb[60].mxu0  ;;  %v1182_v20 = vadd.f32 %v1764_v49, %v2309_v16 }
 0x197   :  { %v1766_v22 = vpop.f32.mrb[61].mxu0  ;;  %v1296_v23 = vpop.f32.mrb[60].mxu1 }
 0x198   :  { %v1767_v5 = vadd.f32 %v1766_v22, %v1765_v61  ;;  %v1292_v0 = vadd.f32 %v1291_v55, %v1182_v20  ;;  %v1836_v25 = vpop.f32.mrb[61].mxu1 }
 0x19a   :  { %v1768_v27 = vpop.f32.mrb[62].mxu0  ;;  %v1187_v4 = vadd.f32 %v1767_v5, %v2312_v24 }
 0x19b   :  { %v1769_v28 = vpop.f32.mrb[63].mxu0  ;;  %v1301_v30 = vpop.f32.mrb[62].mxu1 }
 0x19c   :  { %v1770_v31 = vadd.f32 %v1769_v28, %v1768_v27  ;;  %v1297_v8 = vadd.f32 %v1296_v23, %v1187_v4  ;;  %v1839_v12 = vpop.f32.mrb[63].mxu1 }
 0x19e   :  { %v1771_v34 = vpop.f32.mrb[64].mxu0  ;;  %v1192_v35 = vadd.f32 %v1770_v31, %v2315_v32 }
 0x19f   :  { %v1772_v13 = vpop.f32.mrb[65].mxu0  ;;  %v1306_v36 = vpop.f32.mrb[64].mxu1 }
 0x1a0   :  { %v1773_v38 = vadd.f32 %v1772_v13, %v1771_v34  ;;  %v1302_v16 = vadd.f32 %v1301_v30, %v1192_v35  ;;  %v1842_v39 = vpop.f32.mrb[65].mxu1 }
 0x1a2   :  { %v1325_v19 = vmax.f32 %v1282_v10, %v1302_v16  ;;  %v1774_v42 = vpop.f32.mrb[66].mxu0  ;;  %v1197_v43 = vadd.f32 %v1773_v38, %v2318_v41 }
 0x1a3   :  { %v1775_v21 = vpop.f32.mrb[67].mxu0  ;;  %v1311_v44 = vpop.f32.mrb[66].mxu1 }
 0x1a4   :  { %v1776_v24 = vadd.f32 %v1775_v21, %v1774_v42  ;;  %v1307_v46 = vadd.f32 %v1306_v36, %v1197_v43  ;;  %v1845_v47 = vpop.f32.mrb[67].mxu1 }
 0x1a6   :  { %v1326_v26 = vmax.f32 %v1287_v17, %v1307_v46  ;;  %v1777_v51 = vpop.f32.mrb[68].mxu0  ;;  %v1202_v53 = vadd.f32 %v1776_v24, %v2321_v50 }
 0x1a7   :  { %v1778_v29 = vpop.f32.mrb[69].mxu0  ;;  %v1316_v32 = vpop.f32.mrb[68].mxu1 }
 0x1a8   :  { %v1779_v54 = vadd.f32 %v1778_v29, %v1777_v51  ;;  %v1312_v57 = vadd.f32 %v1311_v44, %v1202_v53  ;;  %v1848_v58 = vpop.f32.mrb[69].mxu1 }
 0x1aa   :  { %v1327_v33 = vmax.f32 %v1292_v0, %v1312_v57  ;;  %v1780_v60 = vpop.f32.mrb[70].mxu0  ;;  %v1207_v62 = vadd.f32 %v1779_v54, %v2324_v59 }
 0x1ab   :  { %v1781_v37 = vpop.f32.mrb[71].mxu0  ;;  %v1321_v41 = vpop.f32.mrb[70].mxu1 }
 0x1ac   :  { %v1782_v63 = vadd.f32 %v1781_v37, %v1780_v60  ;;  %v1317_v48 = vadd.f32 %v1316_v32, %v1207_v62  ;;  %v1851_v1 = vpop.f32.mrb[71].mxu1 }
 0x1ae   :  { %v1328_v40 = vmax.f32 %v1297_v8, %v1317_v48  ;;  %v1212_v3 = vadd.f32 %v1782_v63, %v2327_v2 }
 0x1b0   :  { %v1331_v6 = vmax.f32 %v1327_v33, %v1328_v40  ;;  %v1322_v45 = vadd.f32 %v1321_v41, %v1212_v3 }
 0x1b2   :  { %v1329_v50 = vmax.f32 %v1325_v19, %v1322_v45 }
 0x1b4   :  { %v1330_v7 = vmax.f32 %v1329_v50, %v1326_v26 }
 0x1b6   :  { %v1332_v9 = vmax.f32 %v1330_v7, %v1331_v6 }
 0x1b8   :  { %v1340_v59 = vadd.f32 %v1369_v56, %v1332_v9 }
 0x1ba   :  { %v1341_v10 = vmax.f32 %v1340_v59, 0.0 }
 0x1bc   :  { %1342 = vst [vmem:[#allocation7] sm:$0xff] %v1341_v10 }
 0x1bd   :  { %2156 = shalt.err (!%p2153_p6)
}
 0x1be   :  { %s2157_s18 = scalar_lea.hbm %s2356_s3, 128 }
 0x1bf   :  { %p2158_p7 = scmp.ne.s32.totalorder %s2356_s3, %s2157_s18  ;;  %p2161_p8 = scmp.lt.u32.totalorder %s2157_s18, %s2356_s3 }
 0x1c1   :  { %p2163_p9 = pnand %p2161_p8, %p2158_p7 }
 0x1c3   :  { %2166 = shalt.err (!%p2163_p9)
}
 0x1c4   :  { %1352 = dma.vmem_to_hbm [thread:$0]  %s1350_s14, 128, %s2356_s3, [#allocation4]  }
 0x1c5   :  { %2171 = dma.done.wait [#allocation4], 128  }
 0x1c6   :  { %2172 = vsyncadd [#allocation4], 4294967168 }
 0x1c7   :  { %1356 = vsyncpa [#allocation3], 1 }
 0x1c8   :  { %1357 = vsyncpa [#allocation6], 1 }
 0x1c9   :  { %1358 = vsyncpa [#allocation4], 1 }

</bundles_post_ra>
